<compile_context>
chip_gen: v7x
topology: tpu7x:2x2x1
jax: 0.10.0
libtpu: 0.0.40
codegen_flags: <defaults>
</compile_context>

<pallas_src>
import numpy as np
import jax
import jax.numpy as jnp
from jax import lax
from jax.experimental import pallas as pl
from jax.experimental.pallas import tpu as pltpu


def _vmem_capacity_bytes():
    """Best-effort physical VMEM query; conservative (v7x) fallback."""
    try:
        info = pltpu.get_tpu_info()
        cap = getattr(info, "vmem_capacity_bytes", None)
        if cap:
            return int(cap)
    except Exception:
        pass
    return 64 * 1024 * 1024


def _make_mha_kernel(*, dh, hps, tq_blk, tp, t_real, causal, has_mask, has_qk,
                     compute_dtype):
    """Builds the kernel for one (batch b, query-tile tq, head-group hg) step.

    Refs (in order): x_full (1,Tp,D), x_qtile (1,Tq,D), wq (1,D,hps*dh),
    bq (1,1,hps*dh), wkv (1,D,hps*2dh), bkv (1,1,hps*2dh), wo (1,hps*dh,D),
    bo (1,D), [mask (Tq,Tp)], out (1,Tq,D), [qk (1,hps,Tq,Tp)],
    acc scratch (Tq,D) f32, kv scratch (G,Tp,hps*2dh) compute dtype.
    """
    f32 = jnp.float32

    def kernel(*refs):
        (xkv_ref, xq_ref, wq_ref, bq_ref, wkv_ref, bkv_ref,
         wo_ref, bo_ref) = refs[:8]
        rest = refs[8:]
        if has_mask:
            mask_ref, rest = rest[0], rest[1:]
        out_ref, rest = rest[0], rest[1:]
        if has_qk:
            qk_ref, rest = rest[0], rest[1:]
        acc_ref, kv_ref = rest

        tq = pl.program_id(1)
        hg = pl.program_id(2)

        @pl.when(hg == 0)
        def _init():
            acc_ref[...] = jnp.zeros_like(acc_ref)

        # Fused K/V projection for this head group: computed once per
        # (batch, group) at the first query tile, cached in VMEM and reused
        # by every later query tile of the same batch element.
        @pl.when(tq == 0)
        def _project_kv():
            kv = (jnp.dot(xkv_ref[0], wkv_ref[0],
                          preferred_element_type=f32) + bkv_ref[0])
            kv_ref[hg] = kv.astype(kv_ref.dtype)

        # Q projection for this query tile (dh**-0.25 scale folded into wq/bq).
        q_all = (jnp.dot(xq_ref[0], wq_ref[0],
                         preferred_element_type=f32) + bq_ref[0])   # (Tq, hps*dh) f32

        kv_all = kv_ref[hg]                                          # (Tp, hps*2dh)

        # Mask bits shared by all heads in the group (cheap VPU filler):
        #  * causal: col <= row, generated in-kernel (no (T,T) HBM mask read)
        #  * key padding: col < T_real (host-side padding of T to a lane multiple)
        valid = None
        if causal or tp != t_real:
            cols = lax.broadcasted_iota(jnp.int32, (tq_blk, tp), 1)
            if causal:
                rows = tq * tq_blk + lax.broadcasted_iota(
                    jnp.int32, (tq_blk, tp), 0)
                valid = cols <= rows
            if tp != t_real:
                kvalid = cols < t_real
                valid = kvalid if valid is None else jnp.logical_and(valid,
                                                                     kvalid)

        wv_parts = []
        for hh in range(hps):                      # static Python loop over heads
            q = q_all[:, hh * dh:(hh + 1) * dh].astype(compute_dtype)
            k = kv_all[:, hh * 2 * dh:hh * 2 * dh + dh]
            v = kv_all[:, hh * 2 * dh + dh:(hh + 1) * 2 * dh]
            # Scores: contract the last dims (transposed-RHS contraction on the
            # MXU; no XLU transpose of k).
            s = lax.dot_general(q, k, (((1,), (1,)), ((), ())),
                                preferred_element_type=f32)          # (Tq, Tp)
            if has_mask:
                s = s + mask_ref[...]
            if valid is not None:
                s = jnp.where(valid, s, -jnp.inf)
            if has_qk:
                qk_ref[0, hh] = s.astype(qk_ref.dtype)
            # f32 softmax (matches qk.float() + F.softmax); divide on the EUP.
            # NOTE: a fully-masked row (possible only with a custom padding
            # mask) would produce NaN; the causal / key-padding masks always
            # leave at least one valid column per row.
            m = jnp.max(s, axis=-1, keepdims=True)
            e = jnp.exp(s - m)
            p = e * pl.reciprocal(jnp.sum(e, axis=-1, keepdims=True),
                                  approx=True)
            wv_parts.append(jnp.dot(p.astype(compute_dtype), v,
                                    preferred_element_type=f32))     # (Tq, dh)
        wv = wv_parts[0] if hps == 1 else jnp.concatenate(wv_parts, axis=-1)

        # Per-group contribution to the output projection, accumulated in f32:
        #   concat_h(w_h @ v_h) @ Wo.T == sum_g (wv_g) @ Wo.T[rows of group g]
        acc_ref[...] += jnp.dot(wv.astype(wo_ref.dtype), wo_ref[0],
                                preferred_element_type=f32)

        @pl.when(hg == pl.num_programs(2) - 1)
        def _finalize():
            out_ref[0] = (acc_ref[...] + bo_ref[...]).astype(out_ref.dtype)

    return kernel


def multi_head_attention(x, params, mask, n_head, *, causal=False,
                         compute_dtype=jnp.bfloat16, return_qk=True,
                         qk_dtype=jnp.float32, out_dtype=None,
                         q_block=None, heads_per_step=None):
    """x: (B, T, D); params: PyTorch-convention weights W[out, in].

    mask: optional (T, T) additive mask array (e.g. -inf strictly above the
    diagonal).  Set causal=True to generate the Whisper causal mask in-kernel
    instead of passing one.  Returns (out, qk) like the PyTorch module (or
    just out when return_qk=False).  compute_dtype feeds the MXU (bf16 default;
    accumulation, softmax and — by default — qk stay float32).  On the bf16
    path the returned qk diverges from an f32 reference at bf16 precision.
    """
    B, T, D = x.shape
    assert D % n_head == 0
    dh = D // n_head
    f32 = jnp.float32
    cdt = jnp.dtype(compute_dtype)
    odt = jnp.dtype(x.dtype if out_dtype is None else out_dtype)
    qdt = jnp.dtype(qk_dtype)
    scale = float(dh) ** (-0.25)

    hps = heads_per_step
    if hps is None:
        hps = 2 if (n_head % 2 == 0 and n_head >= 2) else 1
    assert n_head % hps == 0, "heads_per_step must divide n_head"
    n_groups = n_head // hps

    # Pad T to a multiple of 128 so score / qk / out tiles are lane-dense.
    t_pad = ((T + 127) // 128) * 128
    vmem_cap = _vmem_capacity_bytes()

    if q_block is None:
        target = 512 if vmem_cap >= (100 << 20) else 256   # v5e/v6e vs v7x
        q_block = min(t_pad, target)
        while t_pad % q_block:
            q_block //= 2
    assert t_pad % q_block == 0 and q_block % 8 == 0
    num_tq = t_pad // q_block

    # ---- Host-side weight preparation (done once, outside the hot loop) ----
    wq_t = (params["wq"].astype(f32) * scale).T            # (in, out), scale folded
    wk_t = (params["wk"].astype(f32) * scale).T
    wv_t = params["wv"].astype(f32).T
    bq = params["bq"].astype(f32) * scale
    bv = params["bv"].astype(f32)
    wo_t = params["wo"].astype(f32).T
    bo = params["bo"].astype(f32)

    def per_head_cols(w_t):                                 # (D, D) -> (H, D, dh)
        return w_t.reshape(D, n_head, dh).transpose(1, 0, 2)

    def group_cols(w_h):                                    # (H, D, C) -> (G, D, hps*C)
        c = w_h.shape[-1]
        return (w_h.reshape(n_groups, hps, D, c)
                .transpose(0, 2, 1, 3).reshape(n_groups, D, hps * c))

    wq_g = group_cols(per_head_cols(wq_t)).astype(cdt)                   # (G, D, hps*dh)
    wkv_g = group_cols(jnp.concatenate(
        [per_head_cols(wk_t), per_head_cols(wv_t)], axis=-1)).astype(cdt)  # (G, D, hps*2dh)
    bq_g = bq.reshape(n_groups, 1, hps * dh)                              # f32
    bkv_g = jnp.concatenate(
        [jnp.zeros((n_head, dh), f32), bv.reshape(n_head, dh)],
        axis=-1).reshape(n_groups, 1, hps * 2 * dh)                       # [0 | bv], f32
    wo_g = wo_t.reshape(n_head, dh, D).reshape(n_groups, hps * dh, D).astype(cdt)
    bo2 = bo.reshape(1, D)

    xin = x.astype(cdt)
    if t_pad != T:
        xin = jnp.pad(xin, ((0, 0), (0, t_pad - T), (0, 0)))

    has_mask = mask is not None
    operands = [xin, xin, wq_g, bq_g, wkv_g, bkv_g, wo_g, bo2]
    in_specs = [
        pl.BlockSpec((1, t_pad, D), lambda b, t, h: (b, 0, 0)),      # x (keys/values)
        pl.BlockSpec((1, q_block, D), lambda b, t, h: (b, t, 0)),    # x (query tile)
        pl.BlockSpec((1, D, hps * dh), lambda b, t, h: (h, 0, 0)),   # wq[group]
        pl.BlockSpec((1, 1, hps * dh), lambda b, t, h: (h, 0, 0)),   # bq[group]
        pl.BlockSpec((1, D, hps * 2 * dh), lambda b, t, h: (h, 0, 0)),  # wkv[group]
        pl.BlockSpec((1, 1, hps * 2 * dh), lambda b, t, h: (h, 0, 0)),  # bkv[group]
        pl.BlockSpec((1, hps * dh, D), lambda b, t, h: (h, 0, 0)),   # wo.T[group rows]
        pl.BlockSpec((1, D), lambda b, t, h: (0, 0)),                # bo
    ]
    if has_mask:
        m = jnp.asarray(mask, f32)[:T, :T]
        if t_pad != T:   # zero-pad; padded key columns are masked in-kernel
            m = jnp.pad(m, ((0, t_pad - T), (0, t_pad - T)))
        operands.append(m)
        in_specs.append(pl.BlockSpec((q_block, t_pad), lambda b, t, h: (t, 0)))

    out_spec = pl.BlockSpec((1, q_block, D), lambda b, t, h: (b, t, 0))
    out_struct = jax.ShapeDtypeStruct((B, t_pad, D), odt)
    if return_qk:
        out_shape = (out_struct,
                     jax.ShapeDtypeStruct((B, n_head, t_pad, t_pad), qdt))
        out_specs = [out_spec,
                     pl.BlockSpec((1, hps, q_block, t_pad),
                                  lambda b, t, h: (b, h, t, 0))]
    else:
        out_shape = out_struct
        out_specs = out_spec

    kernel = _make_mha_kernel(dh=dh, hps=hps, tq_blk=q_block, tp=t_pad,
                              t_real=T, causal=causal, has_mask=has_mask,
                              has_qk=return_qk, compute_dtype=cdt)

    grid_spec = pltpu.PrefetchScalarGridSpec(
        num_scalar_prefetch=0,
        grid=(B, num_tq, n_groups),             # head groups = inner reduction axis
        in_specs=in_specs,
        out_specs=out_specs,
        scratch_shapes=[
            pltpu.VMEM((q_block, D), jnp.float32),              # out-proj accumulator
            pltpu.VMEM((n_groups, t_pad, hps * 2 * dh), cdt),   # per-batch K/V cache
        ],
    )

    # Dtype-accurate advisory cost estimate (kernel is HBM-bound when qk is on).
    flops = int(2 * B * t_pad * D * D                 # Q projection
                + 4 * B * t_pad * D * D               # K/V projection (once per batch)
                + 4 * B * n_head * t_pad * t_pad * dh  # scores + weighted values
                + 2 * B * t_pad * D * D)              # output projection
    bytes_accessed = int(
        B * t_pad * D * cdt.itemsize                                     # x read
        + B * num_tq * (wq_g.size + wkv_g.size + wo_g.size) * cdt.itemsize  # weight refetch
        + (B * num_tq * n_groups * q_block * t_pad * 4 if has_mask else 0)
        + B * t_pad * D * odt.itemsize                                   # out write
        + (B * n_head * t_pad * t_pad * qdt.itemsize if return_qk else 0))  # qk write
    cost = pl.CostEstimate(flops=flops,
                           transcendentals=int(B * n_head * t_pad * t_pad),
                           bytes_accessed=bytes_accessed)

    # Leave headroom below physical VMEM (56 MiB on a 64 MiB v7x core; up to
    # 100 MiB on 128 MiB v5e/v6e).
    vmem_limit = int(min(vmem_cap - (8 << 20), 100 << 20))
    vmem_limit = max(vmem_limit, 32 << 20)

    result = pl.pallas_call(
        kernel,
        out_shape=out_shape,
        grid_spec=grid_spec,
        compiler_params=pltpu.CompilerParams(
            # Query-tile axis must stay "arbitrary": later query tiles reuse
            # the K/V cache written at tq == 0 of the same batch element.
            dimension_semantics=("parallel", "arbitrary", "arbitrary"),
            vmem_limit_bytes=vmem_limit),
        cost_estimate=cost,
    )(*operands)

    if return_qk:
        out_p, qk_p = result
        return out_p[:, :T, :], qk_p[:, :, :T, :T]
    return result[:, :T, :]


def _reference(x, params, mask, n_head):
    """Plain-JAX reference mirroring the PyTorch forward."""
    B, T, D = x.shape
    dh = D // n_head
    scale = dh ** (-0.25)
    q = x @ params["wq"].T + params["bq"]
    k = x @ params["wk"].T
    v = x @ params["wv"].T + params["bv"]
    qh = (q.reshape(B, T, n_head, dh).transpose(0, 2, 1, 3)) * scale
    kh = (k.reshape(B, T, n_head, dh).transpose(0, 2, 3, 1)) * scale
    vh = v.reshape(B, T, n_head, dh).transpose(0, 2, 1, 3)
    qk = qh @ kh
    if mask is not None:
        qk = qk + mask[:T, :T]
    w = jax.nn.softmax(qk.astype(jnp.float32), axis=-1)
    wv = (w @ vh).transpose(0, 2, 1, 3).reshape(B, T, D)
    out = wv @ params["wo"].T + params["bo"]
    return out, qk


if __name__ == "__main__":
    B, T, D, H = 2, 8, 32, 4   # batch, seq, n_state, n_head (d_head = 8)

    key = jax.random.PRNGKey(0)
    keys = jax.random.split(key, 8)
    s = 0.1
    params = {
        "wq": jax.random.normal(keys[0], (D, D), jnp.float32) * s,
        "bq": jax.random.normal(keys[1], (D,), jnp.float32) * s,
        "wk": jax.random.normal(keys[2], (D, D), jnp.float32) * s,
        "wv": jax.random.normal(keys[3], (D, D), jnp.float32) * s,
        "bv": jax.random.normal(keys[4], (D,), jnp.float32) * s,
        "wo": jax.random.normal(keys[5], (D, D), jnp.float32) * s,
        "bo": jax.random.normal(keys[6], (D,), jnp.float32) * s,
    }
    x = jax.random.normal(keys[7], (B, T, D), jnp.float32)

    # Whisper-style causal mask: -inf strictly above the diagonal.
    causal_mask = jnp.triu(jnp.full((T, T), -jnp.inf, jnp.float32), k=1)

    out_ref, qk_ref = _reference(x, params, causal_mask, H)
    qk_ref_np = np.asarray(qk_ref)
    finite = np.isfinite(qk_ref_np)

    # 1) f32 compute path, causal mask generated in-kernel (no HBM mask read).
    out, qk = multi_head_attention(x, params, None, H, causal=True,
                                   compute_dtype=jnp.float32)
    jax.block_until_ready((out, qk))
    assert out.shape == (B, T, D) and qk.shape == (B, H, T, T)
    assert np.allclose(np.asarray(qk)[finite], qk_ref_np[finite],
                       atol=1e-4, rtol=1e-4)
    assert np.allclose(np.asarray(out), np.asarray(out_ref),
                       atol=5e-3, rtol=5e-3)

    # 2) f32 compute path, explicit additive mask array (tiled (Tq, T) blocks).
    out_m, qk_m = multi_head_attention(x, params, causal_mask, H,
                                       compute_dtype=jnp.float32)
    jax.block_until_ready((out_m, qk_m))
    assert np.allclose(np.asarray(qk_m)[finite], qk_ref_np[finite],
                       atol=1e-4, rtol=1e-4)
    assert np.allclose(np.asarray(out_m), np.asarray(out_ref),
                       atol=5e-3, rtol=5e-3)

    # 3) default bf16 MXU path (f32 accumulation + f32 softmax).
    out_bf, qk_bf = multi_head_attention(x, params, None, H, causal=True)
    jax.block_until_ready((out_bf, qk_bf))
    assert np.allclose(np.asarray(qk_bf)[finite], qk_ref_np[finite],
                       atol=5e-2, rtol=5e-2)
    assert np.allclose(np.asarray(out_bf), np.asarray(out_ref),
                       atol=5e-2, rtol=5e-2)

    # 4) qk writeback disabled (removes the dominant HBM cost at real shapes).
    out_nq = multi_head_attention(x, params, None, H, causal=True,
                                  return_qk=False)
    jax.block_until_ready(out_nq)
    assert out_nq.shape == (B, T, D)
    assert np.allclose(np.asarray(out_nq), np.asarray(out_ref),
                       atol=5e-2, rtol=5e-2)

    print("KERNEL_OK")
</pallas_src>

<mosaic_0001>
module attributes {stable_mosaic.version = 11 : i64} {
  func.func @kernel(%arg0: i32, %arg1: i32, %arg2: i32, %arg3: memref<1x128x32xf32, #tpu.memory_space<vmem>>, %arg4: memref<1x128x32xf32, #tpu.memory_space<vmem>>, %arg5: memref<1x32x16xf32, #tpu.memory_space<vmem>>, %arg6: memref<1x1x16xf32, #tpu.memory_space<vmem>>, %arg7: memref<1x32x32xf32, #tpu.memory_space<vmem>>, %arg8: memref<1x1x32xf32, #tpu.memory_space<vmem>>, %arg9: memref<1x16x32xf32, #tpu.memory_space<vmem>>, %arg10: memref<1x32xf32, #tpu.memory_space<vmem>>, %arg11: memref<1x128x32xf32, #tpu.memory_space<vmem>>, %arg12: memref<1x2x128x128xf32, #tpu.memory_space<vmem>>, %arg13: memref<128x32xf32, #tpu.memory_space<vmem>>, %arg14: memref<2x128x32xf32, #tpu.memory_space<vmem>>) attributes {dimension_semantics = [#tpu.dimension_semantics<parallel>, #tpu.dimension_semantics<arbitrary>, #tpu.dimension_semantics<arbitrary>], iteration_bounds = array<i64: 2, 1, 2>, scalar_prefetch = 0 : i64, scratch_operands = 2 : i64, tpu.core_type = #tpu.core_type<tc>, window_params = [{transform_indices = @transform_0, window_bounds = array<i64: 1, 128, 32>}, {transform_indices = @transform_1, window_bounds = array<i64: 1, 128, 32>}, {transform_indices = @transform_2, window_bounds = array<i64: 1, 32, 16>}, {transform_indices = @transform_3, window_bounds = array<i64: 1, 1, 16>}, {transform_indices = @transform_4, window_bounds = array<i64: 1, 32, 32>}, {transform_indices = @transform_5, window_bounds = array<i64: 1, 1, 32>}, {transform_indices = @transform_6, window_bounds = array<i64: 1, 16, 32>}, {pipeline_mode = #tpu.pipeline_mode<synchronous>, transform_indices = @transform_7, window_bounds = array<i64: 1, 32>}, {transform_indices = @transform_8, window_bounds = array<i64: 1, 128, 32>}, {transform_indices = @transform_9, window_bounds = array<i64: 1, 2, 128, 128>}]} {
    %c0_i32 = arith.constant 0 : i32
    %0 = arith.cmpi eq, %arg2, %c0_i32 : i32
    %1 = arith.extui %0 : i1 to i32
    %c0_i32_0 = arith.constant 0 : i32
    %2 = arith.cmpi ne, %1, %c0_i32_0 : i32
    scf.if %2 {
      %cst_39 = arith.constant 0.000000e+00 : f32
      %77 = vector.broadcast %cst_39 : f32 to vector<128x32xf32>
      %c0_40 = arith.constant 0 : index
      %c0_41 = arith.constant 0 : index
      %78 = vector.load %arg13[%c0_40, %c0_41] : memref<128x32xf32, #tpu.memory_space<vmem>>, vector<128x32xf32>
      tpu.vector_store %arg13[%c0_40, %c0_41], %77 {strides = array<i32>} : memref<128x32xf32, #tpu.memory_space<vmem>>, vector<128x32xf32>,
    } else {
    }
    %c0_i32_1 = arith.constant 0 : i32
    %3 = arith.cmpi eq, %arg1, %c0_i32_1 : i32
    %4 = arith.extui %3 : i1 to i32
    %c0_i32_2 = arith.constant 0 : i32
    %5 = arith.cmpi ne, %4, %c0_i32_2 : i32
    scf.if %5 {
      %c0_39 = arith.constant 0 : index
      %c0_40 = arith.constant 0 : index
      %c0_41 = arith.constant 0 : index
      %77 = vector.load %arg3[%c0_39, %c0_40, %c0_41] : memref<1x128x32xf32, #tpu.memory_space<vmem>>, vector<1x128x32xf32>
      %78 = vector.shape_cast %77 : vector<1x128x32xf32> to vector<128x32xf32>
      %c0_42 = arith.constant 0 : index
      %c0_43 = arith.constant 0 : index
      %c0_44 = arith.constant 0 : index
      %79 = vector.load %arg7[%c0_42, %c0_43, %c0_44] : memref<1x32x32xf32, #tpu.memory_space<vmem>>, vector<1x32x32xf32>
      %80 = vector.shape_cast %79 : vector<1x32x32xf32> to vector<32x32xf32>
      %cst_45 = arith.constant dense<0.000000e+00> : vector<128x32xf32>
      %81 = tpu.matmul %78, %80, %cst_45 {dimension_numbers = #tpu.dot_dimension_numbers<[1], [0], [0], [1], [0, 0, 1, 1], [], []>} : vector<128x32xf32>, vector<32x32xf32>, vector<128x32xf32> -> vector<128x32xf32>
      %c0_46 = arith.constant 0 : index
      %c0_47 = arith.constant 0 : index
      %c0_48 = arith.constant 0 : index
      %82 = vector.load %arg8[%c0_46, %c0_47, %c0_48] : memref<1x1x32xf32, #tpu.memory_space<vmem>>, vector<1x1x32xf32>
      %83 = vector.shape_cast %82 : vector<1x1x32xf32> to vector<1x32xf32>
      %84 = vector.broadcast %83 : vector<1x32xf32> to vector<128x32xf32>
      %85 = arith.addf %81, %84 : vector<128x32xf32>
      %86 = arith.index_cast %arg2 : i32 to index
      %c0_49 = arith.constant 0 : index
      %c0_50 = arith.constant 0 : index
      %87 = vector.load %arg14[%86, %c0_49, %c0_50] : memref<2x128x32xf32, #tpu.memory_space<vmem>>, vector<1x128x32xf32>
      %88 = vector.shape_cast %87 : vector<1x128x32xf32> to vector<128x32xf32>
      %89 = vector.shape_cast %85 : vector<128x32xf32> to vector<1x128x32xf32>
      tpu.vector_store %arg14[%86, %c0_49, %c0_50], %89 {strides = array<i32>} : memref<2x128x32xf32, #tpu.memory_space<vmem>>, vector<1x128x32xf32>,
    } else {
    }
    %c0 = arith.constant 0 : index
    %c0_3 = arith.constant 0 : index
    %c0_4 = arith.constant 0 : index
    %6 = vector.load %arg4[%c0, %c0_3, %c0_4] : memref<1x128x32xf32, #tpu.memory_space<vmem>>, vector<1x128x32xf32>
    %7 = vector.shape_cast %6 : vector<1x128x32xf32> to vector<128x32xf32>
    %c0_5 = arith.constant 0 : index
    %c0_6 = arith.constant 0 : index
    %c0_7 = arith.constant 0 : index
    %8 = vector.load %arg5[%c0_5, %c0_6, %c0_7] : memref<1x32x16xf32, #tpu.memory_space<vmem>>, vector<1x32x16xf32>
    %9 = vector.shape_cast %8 : vector<1x32x16xf32> to vector<32x16xf32>
    %cst = arith.constant dense<0.000000e+00> : vector<128x16xf32>
    %10 = tpu.matmul %7, %9, %cst {dimension_numbers = #tpu.dot_dimension_numbers<[1], [0], [0], [1], [0, 0, 1, 1], [], []>} : vector<128x32xf32>, vector<32x16xf32>, vector<128x16xf32> -> vector<128x16xf32>
    %c0_8 = arith.constant 0 : index
    %c0_9 = arith.constant 0 : index
    %c0_10 = arith.constant 0 : index
    %11 = vector.load %arg6[%c0_8, %c0_9, %c0_10] : memref<1x1x16xf32, #tpu.memory_space<vmem>>, vector<1x1x16xf32>
    %12 = vector.shape_cast %11 : vector<1x1x16xf32> to vector<1x16xf32>
    %13 = vector.broadcast %12 : vector<1x16xf32> to vector<128x16xf32>
    %14 = arith.addf %10, %13 : vector<128x16xf32>
    %15 = arith.index_cast %arg2 : i32 to index
    %c0_11 = arith.constant 0 : index
    %c0_12 = arith.constant 0 : index
    %16 = vector.load %arg14[%15, %c0_11, %c0_12] : memref<2x128x32xf32, #tpu.memory_space<vmem>>, vector<1x128x32xf32>
    %17 = vector.shape_cast %16 : vector<1x128x32xf32> to vector<128x32xf32>
    %18 = tpu.iota {dimensions = array<i32: 1>} : vector<128x128xi32>
    %c128_i32 = arith.constant 128 : i32
    %19 = arith.muli %arg1, %c128_i32 : i32
    %20 = tpu.iota {dimensions = array<i32: 0>} : vector<128x128xi32>
    %21 = vector.broadcast %19 : i32 to vector<128x128xi32>
    %22 = arith.addi %21, %20 : vector<128x128xi32>
    %23 = arith.cmpi sle, %18, %22 : vector<128x128xi32>
    %c8_i32 = arith.constant 8 : i32
    %24 = vector.broadcast %c8_i32 : i32 to vector<128x128xi32>
    %25 = arith.cmpi slt, %18, %24 : vector<128x128xi32>
    %26 = arith.andi %23, %25 : vector<128x128xi1>
    %27 = vector.extract_strided_slice %14 {offsets = [0, 0], sizes = [128, 8], strides = [1, 1]} : vector<128x16xf32> to vector<128x8xf32>
    %28 = vector.extract_strided_slice %17 {offsets = [0, 0], sizes = [128, 8], strides = [1, 1]} : vector<128x32xf32> to vector<128x8xf32>
    %29 = vector.extract_strided_slice %17 {offsets = [0, 8], sizes = [128, 8], strides = [1, 1]} : vector<128x32xf32> to vector<128x8xf32>
    %cst_13 = arith.constant dense<0.000000e+00> : vector<128x128xf32>
    %30 = tpu.matmul %27, %28, %cst_13 {dimension_numbers = #tpu.dot_dimension_numbers<[1], [1], [0], [0], [0, 0, 1, 0], [], []>} : vector<128x8xf32>, vector<128x8xf32>, vector<128x128xf32> -> vector<128x128xf32>
    %cst_14 = arith.constant 0xFF800000 : f32
    %31 = vector.broadcast %cst_14 : f32 to vector<128x128xf32>
    %32 = arith.select %26, %30, %31 : vector<128x128xi1>, vector<128x128xf32>
    %c0_15 = arith.constant 0 : index
    %c0_16 = arith.constant 0 : index
    %c0_17 = arith.constant 0 : index
    %c0_18 = arith.constant 0 : index
    %33 = vector.load %arg12[%c0_15, %c0_16, %c0_17, %c0_18] : memref<1x2x128x128xf32, #tpu.memory_space<vmem>>, vector<1x1x128x128xf32>
    %34 = vector.shape_cast %33 : vector<1x1x128x128xf32> to vector<128x128xf32>
    %35 = vector.shape_cast %32 : vector<128x128xf32> to vector<1x1x128x128xf32>
    tpu.vector_store %arg12[%c0_15, %c0_16, %c0_17, %c0_18], %35 {strides = array<i32>} : memref<1x2x128x128xf32, #tpu.memory_space<vmem>>, vector<1x1x128x128xf32>,
    %cst_19 = arith.constant dense<0xFF800000> : vector<128xf32>
    %36 = vector.multi_reduction <maximumf>, %32, %cst_19 [1] : vector<128x128xf32> to vector<128xf32>
    %37 = vector.shape_cast %36 : vector<128xf32> to vector<128x1xf32>
    %38 = vector.broadcast %37 : vector<128x1xf32> to vector<128x128xf32>
    %39 = arith.subf %32, %38 : vector<128x128xf32>
    %40 = math.exp %39 : vector<128x128xf32>
    %cst_20 = arith.constant dense<0.000000e+00> : vector<128xf32>
    %41 = vector.multi_reduction <add>, %40, %cst_20 [1] : vector<128x128xf32> to vector<128xf32>
    %42 = vector.shape_cast %41 : vector<128xf32> to vector<128x1xf32>
    %43 = tpu.reciprocal %42 {approx = true} : vector<128x1xf32> -> vector<128x1xf32>
    %44 = vector.broadcast %43 : vector<128x1xf32> to vector<128x128xf32>
    %45 = arith.mulf %40, %44 : vector<128x128xf32>
    %cst_21 = arith.constant dense<0.000000e+00> : vector<128x8xf32>
    %46 = tpu.matmul %45, %29, %cst_21 {dimension_numbers = #tpu.dot_dimension_numbers<[1], [0], [0], [1], [0, 0, 1, 1], [], []>} : vector<128x128xf32>, vector<128x8xf32>, vector<128x8xf32> -> vector<128x8xf32>
    %47 = vector.extract_strided_slice %14 {offsets = [0, 8], sizes = [128, 8], strides = [1, 1]} : vector<128x16xf32> to vector<128x8xf32>
    %48 = vector.extract_strided_slice %17 {offsets = [0, 16], sizes = [128, 8], strides = [1, 1]} : vector<128x32xf32> to vector<128x8xf32>
    %49 = vector.extract_strided_slice %17 {offsets = [0, 24], sizes = [128, 8], strides = [1, 1]} : vector<128x32xf32> to vector<128x8xf32>
    %cst_22 = arith.constant dense<0.000000e+00> : vector<128x128xf32>
    %50 = tpu.matmul %47, %48, %cst_22 {dimension_numbers = #tpu.dot_dimension_numbers<[1], [1], [0], [0], [0, 0, 1, 0], [], []>} : vector<128x8xf32>, vector<128x8xf32>, vector<128x128xf32> -> vector<128x128xf32>
    %cst_23 = arith.constant 0xFF800000 : f32
    %51 = vector.broadcast %cst_23 : f32 to vector<128x128xf32>
    %52 = arith.select %26, %50, %51 : vector<128x128xi1>, vector<128x128xf32>
    %c0_24 = arith.constant 0 : index
    %c1 = arith.constant 1 : index
    %c0_25 = arith.constant 0 : index
    %c0_26 = arith.constant 0 : index
    %53 = vector.load %arg12[%c0_24, %c1, %c0_25, %c0_26] : memref<1x2x128x128xf32, #tpu.memory_space<vmem>>, vector<1x1x128x128xf32>
    %54 = vector.shape_cast %53 : vector<1x1x128x128xf32> to vector<128x128xf32>
    %55 = vector.shape_cast %52 : vector<128x128xf32> to vector<1x1x128x128xf32>
    tpu.vector_store %arg12[%c0_24, %c1, %c0_25, %c0_26], %55 {strides = array<i32>} : memref<1x2x128x128xf32, #tpu.memory_space<vmem>>, vector<1x1x128x128xf32>,
    %cst_27 = arith.constant dense<0xFF800000> : vector<128xf32>
    %56 = vector.multi_reduction <maximumf>, %52, %cst_27 [1] : vector<128x128xf32> to vector<128xf32>
    %57 = vector.shape_cast %56 : vector<128xf32> to vector<128x1xf32>
    %58 = vector.broadcast %57 : vector<128x1xf32> to vector<128x128xf32>
    %59 = arith.subf %52, %58 : vector<128x128xf32>
    %60 = math.exp %59 : vector<128x128xf32>
    %cst_28 = arith.constant dense<0.000000e+00> : vector<128xf32>
    %61 = vector.multi_reduction <add>, %60, %cst_28 [1] : vector<128x128xf32> to vector<128xf32>
    %62 = vector.shape_cast %61 : vector<128xf32> to vector<128x1xf32>
    %63 = tpu.reciprocal %62 {approx = true} : vector<128x1xf32> -> vector<128x1xf32>
    %64 = vector.broadcast %63 : vector<128x1xf32> to vector<128x128xf32>
    %65 = arith.mulf %60, %64 : vector<128x128xf32>
    %cst_29 = arith.constant dense<0.000000e+00> : vector<128x8xf32>
    %66 = tpu.matmul %65, %49, %cst_29 {dimension_numbers = #tpu.dot_dimension_numbers<[1], [0], [0], [1], [0, 0, 1, 1], [], []>} : vector<128x128xf32>, vector<128x8xf32>, vector<128x8xf32> -> vector<128x8xf32>
    %67 = tpu.concatenate %46, %66 in 1 : vector<128x8xf32>, vector<128x8xf32> -> vector<128x16xf32>
    %c0_30 = arith.constant 0 : index
    %c0_31 = arith.constant 0 : index
    %68 = vector.load %arg13[%c0_30, %c0_31] : memref<128x32xf32, #tpu.memory_space<vmem>>, vector<128x32xf32>
    %c0_32 = arith.constant 0 : index
    %c0_33 = arith.constant 0 : index
    %c0_34 = arith.constant 0 : index
    %69 = vector.load %arg9[%c0_32, %c0_33, %c0_34] : memref<1x16x32xf32, #tpu.memory_space<vmem>>, vector<1x16x32xf32>
    %70 = vector.shape_cast %69 : vector<1x16x32xf32> to vector<16x32xf32>
    %cst_35 = arith.constant dense<0.000000e+00> : vector<128x32xf32>
    %71 = tpu.matmul %67, %70, %cst_35 {dimension_numbers = #tpu.dot_dimension_numbers<[1], [0], [0], [1], [0, 0, 1, 1], [], []>} : vector<128x16xf32>, vector<16x32xf32>, vector<128x32xf32> -> vector<128x32xf32>
    %72 = arith.addf %68, %71 : vector<128x32xf32>
    %c0_36 = arith.constant 0 : index
    %c0_37 = arith.constant 0 : index
    %73 = vector.load %arg13[%c0_36, %c0_37] : memref<128x32xf32, #tpu.memory_space<vmem>>, vector<128x32xf32>
    tpu.vector_store %arg13[%c0_36, %c0_37], %72 {strides = array<i32>} : memref<128x32xf32, #tpu.memory_space<vmem>>, vector<128x32xf32>,
    %c1_i32 = arith.constant 1 : i32
    %74 = arith.cmpi eq, %arg2, %c1_i32 : i32
    %75 = arith.extui %74 : i1 to i32
    %c0_i32_38 = arith.constant 0 : i32
    %76 = arith.cmpi ne, %75, %c0_i32_38 : i32
    scf.if %76 {
      %c0_39 = arith.constant 0 : index
      %c0_40 = arith.constant 0 : index
      %77 = vector.load %arg13[%c0_39, %c0_40] : memref<128x32xf32, #tpu.memory_space<vmem>>, vector<128x32xf32>
      %c0_41 = arith.constant 0 : index
      %c0_42 = arith.constant 0 : index
      %78 = vector.load %arg10[%c0_41, %c0_42] : memref<1x32xf32, #tpu.memory_space<vmem>>, vector<1x32xf32>
      %79 = vector.broadcast %78 : vector<1x32xf32> to vector<128x32xf32>
      %80 = arith.addf %77, %79 : vector<128x32xf32>
      %c0_43 = arith.constant 0 : index
      %c0_44 = arith.constant 0 : index
      %c0_45 = arith.constant 0 : index
      %81 = vector.load %arg11[%c0_43, %c0_44, %c0_45] : memref<1x128x32xf32, #tpu.memory_space<vmem>>, vector<1x128x32xf32>
      %82 = vector.shape_cast %81 : vector<1x128x32xf32> to vector<128x32xf32>
      %83 = vector.shape_cast %80 : vector<128x32xf32> to vector<1x128x32xf32>
      tpu.vector_store %arg11[%c0_43, %c0_44, %c0_45], %83 {strides = array<i32>} : memref<1x128x32xf32, #tpu.memory_space<vmem>>, vector<1x128x32xf32>,
    } else {
    }
    return
  }
  func.func @transform_0(%arg0: i32, %arg1: i32, %arg2: i32) -> (i32, i32, i32) {
    %c0_i32 = arith.constant 0 : i32
    %c0_i32_0 = arith.constant 0 : i32
    %c0_i32_1 = arith.constant 0 : i32
    return %arg0, %c0_i32, %c0_i32_0 : i32, i32, i32
  }
  func.func @transform_1(%arg0: i32, %arg1: i32, %arg2: i32) -> (i32, i32, i32) {
    %c0_i32 = arith.constant 0 : i32
    %c0_i32_0 = arith.constant 0 : i32
    return %arg0, %arg1, %c0_i32 : i32, i32, i32
  }
  func.func @transform_2(%arg0: i32, %arg1: i32, %arg2: i32) -> (i32, i32, i32) {
    %c0_i32 = arith.constant 0 : i32
    %c0_i32_0 = arith.constant 0 : i32
    %c0_i32_1 = arith.constant 0 : i32
    return %arg2, %c0_i32, %c0_i32_0 : i32, i32, i32
  }
  func.func @transform_3(%arg0: i32, %arg1: i32, %arg2: i32) -> (i32, i32, i32) {
    %c0_i32 = arith.constant 0 : i32
    %c0_i32_0 = arith.constant 0 : i32
    %c0_i32_1 = arith.constant 0 : i32
    return %arg2, %c0_i32, %c0_i32_0 : i32, i32, i32
  }
  func.func @transform_4(%arg0: i32, %arg1: i32, %arg2: i32) -> (i32, i32, i32) {
    %c0_i32 = arith.constant 0 : i32
    %c0_i32_0 = arith.constant 0 : i32
    %c0_i32_1 = arith.constant 0 : i32
    return %arg2, %c0_i32, %c0_i32_0 : i32, i32, i32
  }
  func.func @transform_5(%arg0: i32, %arg1: i32, %arg2: i32) -> (i32, i32, i32) {
    %c0_i32 = arith.constant 0 : i32
    %c0_i32_0 = arith.constant 0 : i32
    %c0_i32_1 = arith.constant 0 : i32
    return %arg2, %c0_i32, %c0_i32_0 : i32, i32, i32
  }
  func.func @transform_6(%arg0: i32, %arg1: i32, %arg2: i32) -> (i32, i32, i32) {
    %c0_i32 = arith.constant 0 : i32
    %c0_i32_0 = arith.constant 0 : i32
    %c0_i32_1 = arith.constant 0 : i32
    return %arg2, %c0_i32, %c0_i32_0 : i32, i32, i32
  }
  func.func @transform_7(%arg0: i32, %arg1: i32, %arg2: i32) -> (i32, i32) {
    %c0_i32 = arith.constant 0 : i32
    %c0_i32_0 = arith.constant 0 : i32
    %c0_i32_1 = arith.constant 0 : i32
    return %c0_i32, %c0_i32_0 : i32, i32
  }
  func.func @transform_8(%arg0: i32, %arg1: i32, %arg2: i32) -> (i32, i32, i32) {
    %c0_i32 = arith.constant 0 : i32
    %c0_i32_0 = arith.constant 0 : i32
    return %arg0, %arg1, %c0_i32 : i32, i32, i32
  }
  func.func @transform_9(%arg0: i32, %arg1: i32, %arg2: i32) -> (i32, i32, i32, i32) {
    %c0_i32 = arith.constant 0 : i32
    %c0_i32_0 = arith.constant 0 : i32
    return %arg0, %arg2, %arg1, %c0_i32 : i32, i32, i32, i32
  }
}

</mosaic_0001>

<bundles_post_ra>
// kernel: tpu_custom_call.1
= control target key start
LH: loop header
LB: loop body
LE: loop exit
PB: predicated region body
PF: predicated region fallthrough
CT: control target
= control target key end

     0   :  { %s5588_s0 = inlined_call_operand.vmem [shape: f32[2,128,32], index: 0, kind: input, shape index: {}]   ;;  %s5589_s1 = inlined_call_operand.vmem [shape: f32[2,128,32], index: 1, kind: input, shape index: {}]   ;;  %s5590_s2 = inlined_call_operand.vmem [shape: f32[2,32,16], index: 2, kind: input, shape index: {}]   ;;  %s5591_s3 = inlined_call_operand.vmem [shape: f32[2,1,16], index: 3, kind: input, shape index: {}]   ;;  %s5592_s4 = inlined_call_operand.vmem [shape: f32[2,32,32], index: 4, kind: input, shape index: {}]   ;;  %s5593_s5 = inlined_call_operand.vmem [shape: f32[2,1,32], index: 5, kind: input, shape index: {}]   ;;  %s5594_s6 = inlined_call_operand.vmem [shape: f32[2,16,32], index: 6, kind: input, shape index: {}]   ;;  %s5595_s7 = inlined_call_operand.vmem [shape: f32[1,32], index: 7, kind: input, shape index: {}]   ;;  %s5596_s8 = inlined_call_operand.vmem [shape: f32[2,128,32], index: 8, kind: output, shape index: {0}]   ;;  %s5597_s9 = inlined_call_operand.hbm [shape: f32[2,4,128,128], index: 9, kind: output, shape index: {1}]  }
   0x1   :  { %5631 = sst [smem:[#allocation29_spill]] %s5588_s0 }
   0x2   :  { %5632 = sst [smem:[#allocation30_spill]] %s5589_s1 }
   0x3   :  { %5633 = sst [smem:[#allocation31_spill]] %s5597_s9 }
   0x4   :  { %15 = vsyncpa [#allocation5], 0 }
   0x5   :  { %17 = vsyncpa [#allocation5 + $0x1], 0  ;;  %s4283_s30 = smov 0   ;;  %s4285_s10 = smov 0  }
   0x6   :  { %s4287_s11 = smov 0   ;;  %s4289_s12 = smov 0  }
   0x7   :  { %s4291_s13 = smov 0   ;;  %s4293_s14 = smov 0  }
   0x8   :  { %s4295_s15 = smov 0   ;;  %s4297_s16 = smov 0  }
   0x9 LB: > { %5634 = sst [smem:[#allocation7_spill]] %s4196_s30  ;;  %s2940_s17 = sadd.s32 4294967295, %s4224_s16   ;;  %s4224_s16 = sphi %s4297_s16, %s23_s16   ;;  %s4220_s15 = sphi %s4295_s15, %s5785_s15   ;;  %s4216_s14 = sphi %s4293_s14, %s5784_s14   ;;  %s4212_s13 = sphi %s4291_s13, %s5783_s13   ;;  %s4208_s12 = sphi %s4289_s12, %s5782_s12   ;;  %s4204_s11 = sphi %s4287_s11, %s5781_s11   ;;  %s4200_s10 = sphi %s4285_s10, %s5787_s10   ;;  %s4196_s30 = sphi %s4283_s30, %s5786_s30  }
   0xa   : > { %5635 = sst [smem:[#allocation8_spill]] %s4204_s11  ;;  %s2941_s18 = sadd.s32 4294967294, %s4224_s16  }
   0xb   : > { %5636 = sst [smem:[#allocation9_spill]] %s4216_s14  ;;  %s35_s19 = sadd.s32 1, %s4216_s14 }
   0xc   : > { %5637 = sst [smem:[#allocation10_spill]] %s4220_s15  ;;  %p36_p0 = scmp.ge.s32.totalorder %s35_s19, 2 }
   0xd   : > { %5638 = sst [smem:[#allocation11_spill]] %s4224_s16  ;;  %s42_s20 = sadd.s32 1, %s4220_s15 }
   0xe   : > { %p296_p1 = scmp.ne.s32.totalorder %s4204_s11, %s4200_s10  ;;  %p297_p2 = scmp.eq.s32.totalorder %s2940_s17, 3 }
   0xf   : > { %s5789_s19 = smov (%p36_p0, %s35_s19), 0  ;;  %s5791_s20 = smov (!%p36_p0, %s42_s20), %s4220_s15 }
  0x10   : > { %5639 = sst [smem:[#allocation12_spill]] %s5789_s19  ;;  %s280_s21 = ssub.s32 %s4216_s14, %s5789_s19 }
  0x11   : > { %p4334_p3 = por %p297_p2, %p296_p1  ;;  %p44_p4 = scmp.ge.s32.totalorder %s5791_s20, 2 }
  0x12   : > { %p302_p5 = scmp.ne.s32.totalorder %s4200_s10, %s4196_s30  ;;  %p303_p6 = scmp.eq.s32.totalorder %s2941_s18, 3 }
  0x13   : > { %s5640_s22 = scalar_select %p4334_p3, 1, 0 }
  0x14   : > { %p2944_p7 = scmp.ge.s32.totalorder %s4224_s16, 1  ;;  %s5793_s20 = smov (%p44_p4, %s5791_s20), 0 }
  0x15   : > { %5641 = sst [smem:[#allocation13_spill]] %s5640_s22  ;;  %p4343_p8 = por %p303_p6, %p302_p5 }
  0x16   : > { %5642 = sst [smem:[#allocation14_spill]] %s5793_s20  ;;  %p381_p9 = scmp.lt.s32.totalorder %s4224_s16, 5 }
  0x17   : > { %s5643_s23 = scalar_select %p4343_p8, 1, 0 }
  0x18   : > { %s279_s24 = ssub.s32 %s4220_s15, %s5793_s20  ;;  %s286_s25 = sadd.s32 1, %s4204_s11 }
  0x19   : > { %5644 = sst [smem:[#allocation15_spill]] %s5643_s23  ;;  %s281_s26 = sor.u32 %s280_s21, %s279_s24 }
  0x1a   : > { %p382_p10 = pnand %p2944_p7, %p381_p9  ;;  %p284_p11 = scmp.eq.s32.totalorder %s281_s26, 0 }
  0x1c   : > { %s4352_s27 = scalar_select %p284_p11, %s4204_s11, %s286_s25  }
  0x1d   : > { %385 = sbr.rel (%p382_p10) target bundleno = 2163 (0x873), region = 52 }
  0x1e   : > { %5645 = sst [smem:[#allocation16_spill]] %s4352_s27 }
  0x24   : > { %s5601_s28 = sand.u32 1, %s4200_s10   ;;  %p456_p12 = scmp.lt.s32.totalorder %s4212_s13, 1 }
  0x25   : > { %s2945_s29 = sshll.u32 %s5601_s28, 8  ;;  %p471_p13 = scmp.lt.s32.totalorder %s4208_s12, 1 }
  0x26   : > { %s457_s17 = scalar_select %p456_p12, %s4212_s13, 1 }
  0x27   : > { %s4361_s18 = scalar_select %p471_p13, %s4208_s12, 1 }
  0x28   : > { %s3100_s21 = sshll.u32 %s457_s17, 7  ;;  %s5646_s0 = sld [smem:[#allocation29_spill]] }
  0x29   : > { %s5647_s1 = sld [smem:[#allocation30_spill]]  ;;  %s3102_s28 = sshll.u32 %s4361_s18, 5 }
  0x2a   : > { %s4381_s16 = scalar_lea.vmem %s5590_s2, %s3102_s28  ;;  %s4386_s24 = scalar_lea.vmem %s5592_s4, %s3102_s28 }
  0x2b   : > { %s486_s19 = scalar_lea.vmem %s5593_s5, %s4361_s18  ;;  %s3104_s20 = sshll.u32 %s4361_s18, 4 }
  0x2c   : > { %s4396_s14 = scalar_lea.vmem %s5594_s6, %s3104_s20  ;;  %s4401_s30 = scalar_lea.vmem %s5596_s8, %s3100_s21 }
  0x2d   : > { %s4403_s23 = scalar_lea.vmem [#allocation4], %s2945_s29  ;;  %p2958_p0 = scmp.ne.s32.totalorder %s4208_s12, 0 }
  0x2e   : > { %s4366_s26 = scalar_lea.vmem %s5646_s0, %s3100_s21  ;;  %vm508_vm0 = vcmask (!%p2958_p0), 261120   ;;  %v4226_v0 = vmov (!%p2958_p0), 0.0  }
  0x2f   : > { %s4371_s15 = scalar_lea.vmem %s5647_s1, %s3100_s21  ;;  %507 = sbr.rel (%p2958_p0) target bundleno = 55 (0x37), region = 56  ;;  %509 = vst.msk [vmem:[#allocation2] sm:$0xff] (!%p2958_p0), %vm508_vm0, %v4226_v0  ;;  %510 = vst.msk [vmem:[#allocation2 + $0x8] sm:$0xff] (!%p2958_p0), %vm508_vm0, %v4226_v0 }
  0x30   : > { %511 = vst.msk [vmem:[#allocation2 + $0x10] sm:$0xff] (!%p2958_p0), %vm508_vm0, %v4226_v0  ;;  %512 = vst.msk [vmem:[#allocation2 + $0x18] sm:$0xff] (!%p2958_p0), %vm508_vm0, %v4226_v0 }
  0x31   : > { %513 = vst.msk [vmem:[#allocation2 + $0x20] sm:$0xff] (!%p2958_p0), %vm508_vm0, %v4226_v0  ;;  %514 = vst.msk [vmem:[#allocation2 + $0x28] sm:$0xff] (!%p2958_p0), %vm508_vm0, %v4226_v0 }
  0x32   : > { %515 = vst.msk [vmem:[#allocation2 + $0x30] sm:$0xff] (!%p2958_p0), %vm508_vm0, %v4226_v0  ;;  %516 = vst.msk [vmem:[#allocation2 + $0x38] sm:$0xff] (!%p2958_p0), %vm508_vm0, %v4226_v0 }
  0x33   : > { %517 = vst.msk [vmem:[#allocation2 + $0x40] sm:$0xff] (!%p2958_p0), %vm508_vm0, %v4226_v0  ;;  %518 = vst.msk [vmem:[#allocation2 + $0x48] sm:$0xff] (!%p2958_p0), %vm508_vm0, %v4226_v0 }
  0x34   : > { %519 = vst.msk [vmem:[#allocation2 + $0x50] sm:$0xff] (!%p2958_p0), %vm508_vm0, %v4226_v0  ;;  %520 = vst.msk [vmem:[#allocation2 + $0x58] sm:$0xff] (!%p2958_p0), %vm508_vm0, %v4226_v0 }
  0x35   : > { %521 = vst.msk [vmem:[#allocation2 + $0x60] sm:$0xff] (!%p2958_p0), %vm508_vm0, %v4226_v0  ;;  %522 = vst.msk [vmem:[#allocation2 + $0x68] sm:$0xff] (!%p2958_p0), %vm508_vm0, %v4226_v0 }
  0x36   : > { %523 = vst.msk [vmem:[#allocation2 + $0x70] sm:$0xff] %vm508_vm0, %v4226_v0  ;;  %524 = vst.msk [vmem:[#allocation2 + $0x78] sm:$0xff] %vm508_vm0, %v4226_v0 }
  0x37 PF: > { %v545_v1 = vld [vmem:[%s4386_s24] sm:$0xff]  ;;  %v546_v2 = vld [vmem:[%s4386_s24 + $0x8] sm:$0xff]  ;;  %v547_v3 = vld [vmem:[%s4386_s24 + $0x10] sm:$0xff]  ;;  %vm5611_vm1 = vcmask 261120   ;;  %s2976_s0 = sshll.u32 %s4208_s12, 7  ;;  %s5648_s22 = scalar_lea.vmem %s5591_s3, %s4361_s18  ;;  %vm5612_vm2 = vcmask 64512  }
  0x38   : > { %v3609_v4 = vpack.c.bf16 %v546_v2, %v545_v1  ;;  %v548_v5 = vld [vmem:[%s4386_s24 + $0x18] sm:$0xff]  ;;  %v529_v6 = vld [vmem:[%s4366_s26] sm:$0xff]  ;;  %v785_v9 = vld [vmem:[%s4381_s16 + $0x8] sm:$0xff]  ;;  %s4504_s11 = scalar_lea.vmem [#allocation3], %s2976_s0  ;;  %s4227_s28 = smov 120  }
  0x39   : > { %v3613_v7 = vpack.c.bf16 %v548_v5, %v547_v3  ;;  %3301 = vmatprep.mubr.msk.f32.mxu0 %vm5611_vm1, %v529_v6  ;;  %v784_v8 = vld [vmem:[%s4381_s16] sm:$0xff]  ;;  %v786_v10 = vld [vmem:[%s4381_s16 + $0x10] sm:$0xff]  ;;  %v787_v11 = vld [vmem:[%s4381_s16 + $0x18] sm:$0xff]  ;;  %s4228_s29 = smov 112   ;;  %s4229_s18 = smov 104  }
  0x3a   : > { %3610 = vmatprep.subr.bf16.mxu0 %v3609_v4  ;;  %v530_v12 = vld [vmem:[%s4366_s26 + $0x8] sm:$0xff]  ;;  %v3617_v13 = vpack.c.bf16 %v785_v9, %v784_v8  ;;  %v3621_v14 = vpack.c.bf16 %v787_v11, %v786_v10  ;;  %v768_v15 = vld [vmem:[%s4371_s15] sm:$0xff]  ;;  %v531_v16 = vld [vmem:[%s4366_s26 + $0x10] sm:$0xff]  ;;  %s4230_s21 = smov 8   ;;  %p3091_p1 = scmp.ne.s32.totalorder %s4208_s12, 1 }
  0x3b   : > { %3612 = vmatpush3.bf16.msra.mxu0 %v3609_v4  ;;  %3333 = vmatprep.mubr.msk.f32.mxu1 %vm5611_vm1, %v768_v15  ;;  %v532_v17 = vld [vmem:[%s4366_s26 + $0x18] sm:$0xff]  ;;  %v533_v18 = vld [vmem:[%s4366_s26 + $0x20] sm:$0xff]  ;;  %v769_v19 = vld [vmem:[%s4371_s15 + $0x8] sm:$0xff] }
  0x3c   : > { %3614 = vmatprep.subr.bf16.mxu0 %v3613_v7  ;;  %3618 = vmatprep.subr.bf16.mxu1 %v3617_v13  ;;  %v534_v20 = vld [vmem:[%s4366_s26 + $0x28] sm:$0xff]  ;;  %v770_v21 = vld [vmem:[%s4371_s15 + $0x10] sm:$0xff]  ;;  %v771_v23 = vld [vmem:[%s4371_s15 + $0x18] sm:$0xff] }
  0x3d   : > { %3620 = vmatpush3.bf16.msra.mxu1 %v3617_v13  ;;  %v535_v22 = vld [vmem:[%s4366_s26 + $0x30] sm:$0xff]  ;;  %v536_v24 = vld [vmem:[%s4366_s26 + $0x38] sm:$0xff]  ;;  %v772_v25 = vld [vmem:[%s4371_s15 + $0x20] sm:$0xff] }
  0x3e   : > { %3622 = vmatprep.subr.bf16.mxu1 %v3621_v14  ;;  %v537_v26 = vld [vmem:[%s4366_s26 + $0x40] sm:$0xff]  ;;  %v773_v27 = vld [vmem:[%s4371_s15 + $0x28] sm:$0xff]  ;;  %v774_v29 = vld [vmem:[%s4371_s15 + $0x30] sm:$0xff] }
  0x3f   : > { %3616 = vmatpush3.bf16.msra.mxu0 %v3613_v7  ;;  %v538_v28 = vld [vmem:[%s4366_s26 + $0x48] sm:$0xff]  ;;  %v539_v30 = vld [vmem:[%s4366_s26 + $0x50] sm:$0xff]  ;;  %v775_v31 = vld [vmem:[%s4371_s15 + $0x38] sm:$0xff] }
  0x40   : > { %v540_v32 = vld [vmem:[%s4366_s26 + $0x58] sm:$0xff]  ;;  %v776_v33 = vld [vmem:[%s4371_s15 + $0x40] sm:$0xff]  ;;  %v777_v35 = vld [vmem:[%s4371_s15 + $0x48] sm:$0xff] }
  0x41   : > { %3624 = vmatpush3.bf16.msra.mxu1 %v3621_v14  ;;  %v541_v34 = vld [vmem:[%s4366_s26 + $0x60] sm:$0xff]  ;;  %v542_v36 = vld [vmem:[%s4366_s26 + $0x68] sm:$0xff]  ;;  %v778_v37 = vld [vmem:[%s4371_s15 + $0x50] sm:$0xff] }
  0x42   : > { %3302 = vmatmul.mubr.msk.f32.vlgmr.msra.gmra.mrb[0].mxu0 %vm5611_vm1, %v530_v12  ;;  %v543_v38 = vld [vmem:[%s4366_s26 + $0x70] sm:$0xff]  ;;  %v779_v39 = vld [vmem:[%s4371_s15 + $0x58] sm:$0xff]  ;;  %v780_v41 = vld [vmem:[%s4371_s15 + $0x60] sm:$0xff] }
  0x43   : > { %3304 = vmatprep.mubr.msk.f32.mxu0 %vm5611_vm1, %v531_v16  ;;  %v544_v40 = vld [vmem:[%s4366_s26 + $0x78] sm:$0xff]  ;;  %v781_v42 = vld [vmem:[%s4371_s15 + $0x68] sm:$0xff]  ;;  %v782_v43 = vld [vmem:[%s4371_s15 + $0x70] sm:$0xff] }
  0x44   : > { %3334 = vmatmul.mubr.msk.f32.vlgmr.msra.gmra.mrb[0].mxu1 %vm5611_vm1, %v769_v19  ;;  %v783_v44 = vld [vmem:[%s4371_s15 + $0x78] sm:$0xff]  ;;  %v4500_v45 = vld [vmem:[%s486_s19] ss:$0 sm:$0xff]  ;;  %vm4537_vm3 = vmpackc.low %vm5612_vm2, %vm5612_vm2 }
  0x45   : > { %3336 = vmatprep.mubr.msk.f32.mxu1 %vm5611_vm1, %v770_v21  ;;  %v4516_v53 = vld [vmem:[%s5648_s22] ss:$0 sm:$0xff] }
  0x46   : > { %3305 = vmatmul.mubr.msk.f32.gmra.mrb[2].mxu0 %vm5611_vm1, %v532_v17 }
  0x47   : > { %3307 = vmatprep.mubr.msk.f32.mxu0 %vm5611_vm1, %v533_v18 }
  0x48   : > { %3337 = vmatmul.mubr.msk.f32.gmra.mrb[2].mxu1 %vm5611_vm1, %v771_v23 }
  0x49   : > { %3339 = vmatprep.mubr.msk.f32.mxu1 %vm5611_vm1, %v772_v25 }
  0x4a   : > { %3308 = vmatmul.mubr.msk.f32.gmra.mrb[4].mxu0 %vm5611_vm1, %v534_v20 }
  0x4b   : > { %3310 = vmatprep.mubr.msk.f32.mxu0 %vm5611_vm1, %v535_v22 }
  0x4c   : > { %3340 = vmatmul.mubr.msk.f32.gmra.mrb[4].mxu1 %vm5611_vm1, %v773_v27 }
  0x4d   : > { %3342 = vmatprep.mubr.msk.f32.mxu1 %vm5611_vm1, %v774_v29 }
  0x4e   : > { %3311 = vmatmul.mubr.msk.f32.gmra.mrb[6].mxu0 %vm5611_vm1, %v536_v24 }
  0x4f   : > { %3313 = vmatprep.mubr.msk.f32.mxu0 %vm5611_vm1, %v537_v26 }
  0x50   : > { %3343 = vmatmul.mubr.msk.f32.gmra.mrb[6].mxu1 %vm5611_vm1, %v775_v31 }
  0x51   : > { %3345 = vmatprep.mubr.msk.f32.mxu1 %vm5611_vm1, %v776_v33 }
  0x52   : > { %3314 = vmatmul.mubr.msk.f32.gmra.mrb[8].mxu0 %vm5611_vm1, %v538_v28 }
  0x53   : > { %3316 = vmatprep.mubr.msk.f32.mxu0 %vm5611_vm1, %v539_v30 }
  0x54   : > { %3346 = vmatmul.mubr.msk.f32.gmra.mrb[8].mxu1 %vm5611_vm1, %v777_v35 }
  0x55   : > { %3348 = vmatprep.mubr.msk.f32.mxu1 %vm5611_vm1, %v778_v37 }
  0x56   : > { %3317 = vmatmul.mubr.msk.f32.gmra.mrb[10].mxu0 %vm5611_vm1, %v540_v32 }
  0x57   : > { %3319 = vmatprep.mubr.msk.f32.mxu0 %vm5611_vm1, %v541_v34 }
  0x58   : > { %3349 = vmatmul.mubr.msk.f32.gmra.mrb[10].mxu1 %vm5611_vm1, %v779_v39 }
  0x59   : > { %3351 = vmatprep.mubr.msk.f32.mxu1 %vm5611_vm1, %v780_v41 }
  0x5a   : > { %3320 = vmatmul.mubr.msk.f32.gmra.mrb[12].mxu0 %vm5611_vm1, %v542_v36 }
  0x5b   : > { %3322 = vmatprep.mubr.msk.f32.mxu0 %vm5611_vm1, %v543_v38 }
  0x5c   : > { %3352 = vmatmul.mubr.msk.f32.gmra.mrb[12].mxu1 %vm5611_vm1, %v781_v42 }
  0x5d   : > { %3354 = vmatprep.mubr.msk.f32.mxu1 %vm5611_vm1, %v782_v43 }
  0x5e   : > { %3323 = vmatmul.mubr.msk.f32.gmra.mrb[14].mxu0 %vm5611_vm1, %v544_v40 }
  0x60   : > { %3355 = vmatmul.mubr.msk.f32.gmra.mrb[14].mxu1 %vm5611_vm1, %v783_v44 }
 0x115   : > { %v3303_v46 = vpop.f32.mrb[0].mxu0 }
 0x116   : > { %v677_v47 = vadd.f32 %v3303_v46, %v4500_v45  ;;  %v671_v48 = vpop.f32.mrb[1].mxu0 }
 0x117   : > { %v672_v49 = vadd.f32 %v4500_v45, %v671_v48  ;;  %v3335_v55 = vpop.f32.mrb[0].mxu1 }
 0x118   : > { %753 = vst.msk [vmem:[%s4504_s11 + $0x8] sm:$0xff] %vm5611_vm1, %v677_v47  ;;  %v4524_v57 = vadd.f32 %v3335_v55, %v4516_v53  ;;  %v910_v58 = vpop.f32.mrb[1].mxu1 }
 0x119   : > { %752 = vst.msk [vmem:[%s4504_s11] sm:$0xff] %vm5611_vm1, %v672_v49  ;;  %v3306_v50 = vpop.f32.mrb[2].mxu0  ;;  %v4528_v61 = vadd.f32 %v4516_v53, %v910_v58 }
 0x11a   : > { %v687_v51 = vadd.f32 %v3306_v50, %v4500_v45  ;;  %v681_v52 = vpop.f32.mrb[3].mxu0 }
 0x11b   : > { %v682_v54 = vadd.f32 %v4500_v45, %v681_v52  ;;  %v3338_v2 = vpop.f32.mrb[2].mxu1  ;;  %3389 = vmatprep.mubr.msk.f32.mxu0 %vm5612_vm2, %v4528_v61 }
 0x11c   : > { %755 = vst.msk [vmem:[%s4504_s11 + $0x18] sm:$0xff] %vm5611_vm1, %v687_v51  ;;  %v4548_v6 = vadd.f32 %v3338_v2, %v4516_v53  ;;  %v920_v7 = vpop.f32.mrb[3].mxu1 }
 0x11d   : > { %754 = vst.msk [vmem:[%s4504_s11 + $0x10] sm:$0xff] %vm5611_vm1, %v682_v54  ;;  %v3309_v56 = vpop.f32.mrb[4].mxu0  ;;  %v4552_v10 = vadd.f32 %v4516_v53, %v920_v7 }
 0x11e   : > { %v697_v59 = vadd.f32 %v3309_v56, %v4500_v45  ;;  %v691_v60 = vpop.f32.mrb[5].mxu0 }
 0x11f   : > { %v692_v62 = vadd.f32 %v4500_v45, %v691_v60  ;;  %v992_v63 = vld [vmem:[%s4504_s11 + $0x8] sm:$0xff]  ;;  %v3341_v14 = vpop.f32.mrb[4].mxu1 }
 0x120   : > { %757 = vst.msk [vmem:[%s4504_s11 + $0x28] sm:$0xff] %vm5611_vm1, %v697_v59  ;;  %v991_v0 = vld [vmem:[%s4504_s11] sm:$0xff]  ;;  %v4570_v18 = vadd.f32 %v3341_v14, %v4516_v53  ;;  %v930_v19 = vpop.f32.mrb[5].mxu1 }
 0x121   : > { %756 = vst.msk [vmem:[%s4504_s11 + $0x20] sm:$0xff] %vm5611_vm1, %v692_v62  ;;  %v4545_v3 = vpack.i.bf16 %v992_v63, %v991_v0  ;;  %v3625_v4 = vpack.c.bf16 %v992_v63, %v991_v0  ;;  %v3312_v5 = vpop.f32.mrb[6].mxu0  ;;  %v4574_v22 = vadd.f32 %v4516_v53, %v930_v19 }
 0x122   : > { %v707_v8 = vadd.f32 %v3312_v5, %v4500_v45  ;;  %v701_v9 = vpop.f32.mrb[7].mxu0 }
 0x123   : > { %3883 = vrot.lane.b32.xlu0 %v4545_v3, %s4227_s28  ;;  %3627 = vmatprep.subr.msk.bf16.mxu0 %vm4537_vm3, %v3625_v4  ;;  %v702_v11 = vadd.f32 %v4500_v45, %v701_v9  ;;  %v994_v12 = vld [vmem:[%s4504_s11 + $0x18] sm:$0xff]  ;;  %v3344_v26 = vpop.f32.mrb[6].mxu1 }
 0x124   : > { %3630 = vmatpush3.bf16.xpose.msk.msra.mxu0 %vm4537_vm3, %v3625_v4  ;;  %759 = vst.msk [vmem:[%s4504_s11 + $0x38] sm:$0xff] %vm5611_vm1, %v707_v8  ;;  %v993_v13 = vld [vmem:[%s4504_s11 + $0x10] sm:$0xff]  ;;  %v4592_v30 = vadd.f32 %v3344_v26, %v4516_v53  ;;  %v940_v31 = vpop.f32.mrb[7].mxu1 }
 0x125   : > { %758 = vst.msk [vmem:[%s4504_s11 + $0x30] sm:$0xff] %vm5611_vm1, %v702_v11  ;;  %v4567_v15 = vpack.i.bf16 %v994_v12, %v993_v13  ;;  %v3315_v16 = vpop.f32.mrb[8].mxu0  ;;  %v3631_v17 = vpack.c.bf16 %v994_v12, %v993_v13  ;;  %v4596_v34 = vadd.f32 %v4516_v53, %v940_v31 }
 0x126   : > { %v717_v20 = vadd.f32 %v3315_v16, %v4500_v45  ;;  %v711_v21 = vpop.f32.mrb[9].mxu0 }
 0x127   : > { %3893 = vrot.lane.b32.xlu1 %v4567_v15, %s4227_s28  ;;  %3888 = vrot.lane.b32.xlu0 %v4545_v3, %s4228_s29  ;;  %v712_v23 = vadd.f32 %v4500_v45, %v711_v21  ;;  %v996_v24 = vld [vmem:[%s4504_s11 + $0x28] sm:$0xff]  ;;  %v3347_v38 = vpop.f32.mrb[8].mxu1 }
 0x128   : > { %761 = vst.msk [vmem:[%s4504_s11 + $0x48] sm:$0xff] %vm5611_vm1, %v717_v20  ;;  %3633 = vmatprep.subr.msk.bf16.mxu0 %vm4537_vm3, %v3631_v17  ;;  %v995_v25 = vld [vmem:[%s4504_s11 + $0x20] sm:$0xff]  ;;  %v4616_v41 = vadd.f32 %v3347_v38, %v4516_v53  ;;  %v950_v42 = vpop.f32.mrb[9].mxu1 }
 0x129   : > { %760 = vst.msk [vmem:[%s4504_s11 + $0x40] sm:$0xff] %vm5611_vm1, %v712_v23  ;;  %v3318_v27 = vpop.f32.mrb[10].mxu0  ;;  %v4589_v28 = vpack.i.bf16 %v996_v24, %v995_v25  ;;  %v3637_v29 = vpack.c.bf16 %v996_v24, %v995_v25  ;;  %v4620_v46 = vadd.f32 %v4516_v53, %v950_v42 }
 0x12a   : > { %v727_v32 = vadd.f32 %v3318_v27, %v4500_v45  ;;  %v721_v33 = vpop.f32.mrb[11].mxu0 }
 0x12b   : > { %3898 = vrot.lane.b32.xlu1 %v4567_v15, %s4228_s29  ;;  %v722_v35 = vadd.f32 %v4500_v45, %v721_v33  ;;  %3908 = vrot.lane.b32.xlu0 %v4589_v28, %s4228_s29  ;;  %v998_v36 = vld [vmem:[%s4504_s11 + $0x38] sm:$0xff]  ;;  %v3350_v50 = vpop.f32.mrb[10].mxu1 }
 0x12c   : > { %3636 = vmatpush3.bf16.xpose.msk.msra.mxu0 %vm4537_vm3, %v3631_v17  ;;  %763 = vst.msk [vmem:[%s4504_s11 + $0x58] sm:$0xff] %vm5611_vm1, %v727_v32  ;;  %v997_v37 = vld [vmem:[%s4504_s11 + $0x30] sm:$0xff]  ;;  %v4636_v55 = vadd.f32 %v3350_v50, %v4516_v53  ;;  %v960_v56 = vpop.f32.mrb[11].mxu1 }
 0x12d   : > { %762 = vst.msk [vmem:[%s4504_s11 + $0x50] sm:$0xff] %vm5611_vm1, %v722_v35  ;;  %v3321_v39 = vpop.f32.mrb[12].mxu0  ;;  %3639 = vmatprep.subr.msk.bf16.mxu0 %vm4537_vm3, %v3637_v29  ;;  %v4613_v40 = vpack.i.bf16 %v998_v36, %v997_v37  ;;  %v3643_v54 = vpack.c.bf16 %v998_v36, %v997_v37  ;;  %v4640_v60 = vadd.f32 %v4516_v53, %v960_v56 }
 0x12e   : > { %v737_v43 = vadd.f32 %v3321_v39, %v4500_v45  ;;  %v731_v44 = vpop.f32.mrb[13].mxu0 }
 0x12f   : > { %3903 = vrot.lane.b32.xlu1 %v4589_v28, %s4227_s28  ;;  %v732_v47 = vadd.f32 %v4500_v45, %v731_v44  ;;  %3913 = vrot.lane.b32.xlu0 %v4613_v40, %s4227_s28  ;;  %v1000_v48 = vld [vmem:[%s4504_s11 + $0x48] sm:$0xff]  ;;  %v3353_v2 = vpop.f32.mrb[12].mxu1 }
 0x130   : > { %765 = vst.msk [vmem:[%s4504_s11 + $0x68] sm:$0xff] %vm5611_vm1, %v737_v43  ;;  %v999_v49 = vld [vmem:[%s4504_s11 + $0x40] sm:$0xff]  ;;  %v4660_v4 = vadd.f32 %v3353_v2, %v4516_v53  ;;  %v970_v5 = vpop.f32.mrb[13].mxu1 }
 0x131   : > { %764 = vst.msk [vmem:[%s4504_s11 + $0x60] sm:$0xff] %vm5611_vm1, %v732_v47  ;;  %v3324_v51 = vpop.f32.mrb[14].mxu0  ;;  %v4633_v52 = vpack.i.bf16 %v1000_v48, %v999_v49  ;;  %v4663_v7 = vadd.f32 %v4516_v53, %v970_v5  ;;  %v3649_v13 = vpack.c.bf16 %v1000_v48, %v999_v49 }
 0x132   : > { %v747_v58 = vadd.f32 %v3324_v51, %v4500_v45  ;;  %v741_v59 = vpop.f32.mrb[15].mxu0 }
 0x133   : > { %v742_v62 = vadd.f32 %v4500_v45, %v741_v59  ;;  %3918 = vrot.lane.b32.xlu1 %v4613_v40, %s4228_s29  ;;  %3923 = vrot.lane.b32.xlu0 %v4633_v52, %s4227_s28  ;;  %v1002_v63 = vld [vmem:[%s4504_s11 + $0x58] sm:$0xff]  ;;  %v3356_v11 = vpop.f32.mrb[14].mxu1 }
 0x134   : > { %3642 = vmatpush3.bf16.xpose.msk.msra.mxu0 %vm4537_vm3, %v3637_v29  ;;  %767 = vst.msk [vmem:[%s4504_s11 + $0x78] sm:$0xff] %vm5611_vm1, %v747_v58  ;;  %v1001_v0 = vld [vmem:[%s4504_s11 + $0x50] sm:$0xff]  ;;  %v4672_v14 = vadd.f32 %v3356_v11, %v4516_v53  ;;  %v980_v16 = vpop.f32.mrb[15].mxu1 }
 0x135   : > { %766 = vst.msk [vmem:[%s4504_s11 + $0x70] sm:$0xff] %vm5611_vm1, %v742_v62  ;;  %3645 = vmatprep.subr.msk.bf16.mxu0 %vm4537_vm3, %v3643_v54  ;;  %v4657_v45 = vpack.i.bf16 %v1002_v63, %v1001_v0  ;;  %v4675_v17 = vadd.f32 %v4516_v53, %v980_v16  ;;  %v3655_v23 = vpack.c.bf16 %v1002_v63, %v1001_v0 }
 0x137   : > { %5651 = vst [vmem:[#allocation17_spill] sm:$0xff] %v4657_v45  ;;  %3928 = vrot.lane.b32.xlu1 %v4657_v45, %s4227_s28  ;;  %v1004_v8 = vld [vmem:[%s4504_s11 + $0x68] sm:$0xff] }
 0x138   : > { %v1003_v9 = vld [vmem:[%s4504_s11 + $0x60] sm:$0xff] }
 0x139   : > { %v4669_v12 = vpack.i.bf16 %v1004_v8, %v1003_v9  ;;  %v3661_v53 = vpack.c.bf16 %v1004_v8, %v1003_v9 }
 0x13b   : > { %3933 = vrot.lane.b32.xlu1 %v4669_v12, %s4227_s28  ;;  %v1006_v19 = vld [vmem:[%s4504_s11 + $0x78] sm:$0xff] }
 0x13c   : > { %3648 = vmatpush3.bf16.xpose.msk.msra.mxu0 %vm4537_vm3, %v3643_v54  ;;  %v1005_v20 = vld [vmem:[%s4504_s11 + $0x70] sm:$0xff] }
 0x13d   : > { %3651 = vmatprep.subr.msk.bf16.mxu0 %vm4537_vm3, %v3649_v13  ;;  %v4685_v21 = vpack.i.bf16 %v1006_v19, %v1005_v20  ;;  %v3667_v24 = vpack.c.bf16 %v1006_v19, %v1005_v20 }
 0x13f   : > { %3938 = vrot.lane.b32.xlu1 %v4685_v21, %s4227_s28 }
 0x144   : > { %3654 = vmatpush3.bf16.xpose.msk.msra.mxu0 %vm4537_vm3, %v3649_v13 }
 0x145   : > { %3657 = vmatprep.subr.msk.bf16.mxu0 %vm4537_vm3, %v3655_v23 }
 0x14c   : > { %3660 = vmatpush3.bf16.xpose.msk.msra.mxu0 %vm4537_vm3, %v3655_v23 }
 0x14d   : > { %3663 = vmatprep.subr.msk.bf16.mxu0 %vm4537_vm3, %v3661_v53 }
 0x154   : > { %3666 = vmatpush3.bf16.xpose.msk.msra.mxu0 %vm4537_vm3, %v3661_v53 }
 0x155   : > { %3669 = vmatprep.subr.msk.bf16.mxu0 %vm4537_vm3, %v3667_v24 }
 0x15c   : > { %3672 = vmatpush3.bf16.xpose.msk.msra.mxu0 %vm4537_vm3, %v3667_v24 }
 0x163   : > { %3390 = vmatmul.mubr.msk.f32.vlgmr.msra.gmra.mrb[16].mxu0 %vm5612_vm2, %v4524_v57 }
 0x164   : > { %3392 = vmatprep.mubr.msk.f32.mxu0 %vm5612_vm2, %v4552_v10 }
 0x167   : > { %3393 = vmatmul.mubr.msk.f32.gmra.mrb[18].mxu0 %vm5612_vm2, %v4548_v6 }
 0x168   : > { %3395 = vmatprep.mubr.msk.f32.mxu0 %vm5612_vm2, %v4574_v22 }
 0x16b   : > { %3396 = vmatmul.mubr.msk.f32.gmra.mrb[20].mxu0 %vm5612_vm2, %v4570_v18 }
 0x16c   : > { %3398 = vmatprep.mubr.msk.f32.mxu0 %vm5612_vm2, %v4596_v34 }
 0x16f   : > { %3399 = vmatmul.mubr.msk.f32.gmra.mrb[22].mxu0 %vm5612_vm2, %v4592_v30 }
 0x170   : > { %3401 = vmatprep.mubr.msk.f32.mxu0 %vm5612_vm2, %v4620_v46 }
 0x173   : > { %3402 = vmatmul.mubr.msk.f32.gmra.mrb[24].mxu0 %vm5612_vm2, %v4616_v41 }
 0x174   : > { %3404 = vmatprep.mubr.msk.f32.mxu0 %vm5612_vm2, %v4640_v60 }
 0x177   : > { %3405 = vmatmul.mubr.msk.f32.gmra.mrb[26].mxu0 %vm5612_vm2, %v4636_v55 }
 0x178   : > { %3407 = vmatprep.mubr.msk.f32.mxu0 %vm5612_vm2, %v4663_v7 }
 0x17b   : > { %3408 = vmatmul.mubr.msk.f32.gmra.mrb[28].mxu0 %vm5612_vm2, %v4660_v4 }
 0x17c   : > { %3410 = vmatprep.mubr.msk.f32.mxu0 %vm5612_vm2, %v4675_v17 }
 0x17f   : > { %3411 = vmatmul.mubr.msk.f32.gmra.mrb[30].mxu0 %vm5612_vm2, %v4672_v14 }
 0x195   : > { %v3884_v25 = vpop.permute.xlu0 %3883 }
 0x196   : > { %v3886_v26 = vunpack.i.h.bf16 %v3884_v25  ;;  %v3885_v27 = vunpack.i.l.bf16 %v3884_v25  ;;  %v1007_v25 = vlaneseq }
 0x198   : > { %v3673_v29 = vpack.c.bf16 %v3886_v26, %v3885_v27  ;;  %v4744_v26 = vshrl.u32 %v1007_v25, 7  ;;  %v4746_v27 = vand.u32 127, %v1007_v25 }
 0x199   : > { %v3894_v31 = vpop.permute.xlu1 %3893  ;;  %v3889_v32 = vpop.permute.xlu0 %3888 }
 0x19a   : > { %v3896_v33 = vunpack.i.h.bf16 %v3894_v31  ;;  %v3895_v35 = vunpack.i.l.bf16 %v3894_v31  ;;  %3674 = vmatprep.subr.bf16.mxu1 %v3673_v29  ;;  %v3891_v23 = vunpack.i.h.bf16 %v3889_v32  ;;  %v3890_v53 = vunpack.i.l.bf16 %v3889_v32 }
 0x19b   : > { %3676 = vmatpush3.bf16.msra.mxu1 %v3673_v29  ;;  %v1012_v29 = vadd.s32 8, %v4744_v26  ;;  %vm1060_vm5 = vcmp.lt.s32.totalorder %v4746_v27, 8  ;;  %v1014_v31 = vadd.s32 24, %v4744_v26  ;;  %vm1044_vm6 = vcmp.le.s32.totalorder %v4746_v27, %v4744_v26 }
 0x19c   : > { %v3677_v36 = vpack.c.bf16 %v3896_v33, %v3895_v35  ;;  %v4739_v24 = vpack.c.bf16 %v3891_v23, %v3890_v53  ;;  %v1013_v32 = vadd.s32 16, %v4744_v26  ;;  %vm4763_vm8 = vmand %vm1044_vm6, %vm1060_vm5  ;;  %v1021_v53 = vadd.s32 80, %v4744_v26 }
 0x19d   : > { %v4733_v37 = vpop.permute.xlu1 %3898  ;;  %v4735_v38 = vpop.permute.xlu0 %3908  ;;  %vm1045_vm4 = vcmp.le.s32.totalorder %v4746_v27, %v1012_v29  ;;  %vm1047_vm9 = vcmp.le.s32.totalorder %v4746_v27, %v1014_v31 }
 0x19e   : > { %3678 = vmatprep.subr.bf16.mxu1 %v3677_v36  ;;  %vm4757_vm7 = vmand %vm1045_vm4, %vm1060_vm5  ;;  %vm1046_vm10 = vcmp.le.s32.totalorder %v4746_v27, %v1013_v32  ;;  %v5671_v32 = vmov 0 }
 0x19f   : > { %3680 = vmatpush3.bf16.msra.mxu1 %v3677_v36  ;;  %v1016_v36 = vadd.s32 40, %v4744_v26  ;;  %vm4784_vm11 = vmand %vm1047_vm9, %vm1060_vm5 }
 0x1a0   : > { %vm4792_vm12 = vmand %vm1046_vm10, %vm1060_vm5 }
 0x1a1   : > { %v3904_v39 = vpop.permute.xlu1 %3903  ;;  %v3914_v42 = vpop.permute.xlu0 %3913  ;;  %vm1049_vm13 = vcmp.le.s32.totalorder %v4746_v27, %v1016_v36  ;;  %v5674_v36 = vmov 0 }
 0x1a2   : > { %v3906_v43 = vunpack.i.h.bf16 %v3904_v39  ;;  %v3905_v44 = vunpack.i.l.bf16 %v3904_v39  ;;  %v3916_v47 = vunpack.i.h.bf16 %v3914_v42  ;;  %v3915_v48 = vunpack.i.l.bf16 %v3914_v42  ;;  %vm4814_vm15 = vmand %vm1049_vm13, %vm1060_vm5 }
 0x1a3   : > { %v1015_v42 = vadd.s32 32, %v4744_v26 }
 0x1a4   : > { %v3681_v49 = vpack.c.bf16 %v3906_v43, %v3905_v44  ;;  %v3685_v50 = vpack.c.bf16 %v3916_v47, %v3915_v48 }
 0x1a5   : > { %v4737_v51 = vpop.permute.xlu1 %3918  ;;  %v3924_v54 = vpop.permute.xlu0 %3923  ;;  %vm1048_vm14 = vcmp.le.s32.totalorder %v4746_v27, %v1015_v42 }
 0x1a6   : > { %3682 = vmatprep.subr.bf16.mxu1 %v3681_v49  ;;  %v3926_v56 = vunpack.i.h.bf16 %v3924_v54  ;;  %v3925_v58 = vunpack.i.l.bf16 %v3924_v54  ;;  %vm4822_vm0 = vmand %vm1048_vm14, %vm1060_vm5 }
 0x1a7   : > { %3684 = vmatpush3.bf16.msra.mxu1 %v3681_v49 }
 0x1a8   : > { %3686 = vmatprep.subr.bf16.mxu1 %v3685_v50  ;;  %v3689_v59 = vpack.c.bf16 %v3926_v56, %v3925_v58  ;;  %v1017_v56 = vadd.s32 48, %v4744_v26 }
 0x1a9   : > { %v3929_v62 = vpop.permute.xlu1 %3928 }
 0x1aa   : > { %v3931_v63 = vunpack.i.h.bf16 %v3929_v62  ;;  %v3930_v0 = vunpack.i.l.bf16 %v3929_v62  ;;  %vm1050_vm6 = vcmp.le.s32.totalorder %v4746_v27, %v1017_v56 }
 0x1ab   : > { %3688 = vmatpush3.bf16.msra.mxu1 %v3685_v50  ;;  %v1018_v50 = vadd.s32 56, %v4744_v26  ;;  %vm4852_vm10 = vmand %vm1050_vm6, %vm1060_vm5 }
 0x1ac   : > { %3690 = vmatprep.subr.bf16.mxu1 %v3689_v59  ;;  %v3693_v2 = vpack.c.bf16 %v3931_v63, %v3930_v0  ;;  %v5662_v0 = vmov 0 }
 0x1ad   : > { %v3934_v5 = vpop.permute.xlu1 %3933  ;;  %v5663_v0 = vsel %vm4822_vm0, 4294967295, %v5662_v0  ;;  %vm1051_vm4 = vcmp.le.s32.totalorder %v4746_v27, %v1018_v50 }
 0x1ae   : > { %v3936_v8 = vunpack.i.h.bf16 %v3934_v5  ;;  %v3935_v9 = vunpack.i.l.bf16 %v3934_v5  ;;  %5664 = vst [vmem:[#allocation18_spill] sm:$0xff] %v5663_v0  ;;  %vm4843_vm9 = vmand %vm1051_vm4, %vm1060_vm5 }
 0x1af   : > { %3692 = vmatpush3.bf16.msra.mxu1 %v3689_v59 }
 0x1b0   : > { %3694 = vmatprep.subr.bf16.mxu1 %v3693_v2  ;;  %v3697_v11 = vpack.c.bf16 %v3936_v8, %v3935_v9  ;;  %v1019_v8 = vadd.s32 64, %v4744_v26 }
 0x1b1   : > { %v3939_v13 = vpop.permute.xlu1 %3938 }
 0x1b2   : > { %v3941_v16 = vunpack.i.h.bf16 %v3939_v13  ;;  %v3940_v19 = vunpack.i.l.bf16 %v3939_v13  ;;  %vm1052_vm14 = vcmp.le.s32.totalorder %v4746_v27, %v1019_v8 }
 0x1b3   : > { %3696 = vmatpush3.bf16.msra.mxu1 %v3693_v2  ;;  %v1020_v2 = vadd.s32 72, %v4744_v26  ;;  %vm4882_vm6 = vmand %vm1052_vm14, %vm1060_vm5 }
 0x1b4   : > { %3698 = vmatprep.subr.bf16.mxu1 %v3697_v11  ;;  %v3701_v20 = vpack.c.bf16 %v3941_v16, %v3940_v19  ;;  %v5665_v16 = vmov 0  ;;  %v5668_v19 = vmov 0  ;;  %v5675_v36 = vsel %vm4882_vm6, 4294967295, %v5674_v36 }
 0x1b5   : > { %v5666_v16 = vsel %vm4843_vm9, 4294967295, %v5665_v16  ;;  %v5669_v19 = vsel %vm4852_vm10, 4294967295, %v5668_v19  ;;  %vm1053_vm13 = vcmp.le.s32.totalorder %v4746_v27, %v1020_v2  ;;  %5676 = vst [vmem:[#allocation22_spill] sm:$0xff] %v5675_v36  ;;  %v5680_v2 = vmov 0 }
 0x1b6   : > { %5667 = vst [vmem:[#allocation19_spill] sm:$0xff] %v5666_v16  ;;  %5670 = vst [vmem:[#allocation20_spill] sm:$0xff] %v5669_v19 }
 0x1b7   : > { %3700 = vmatpush3.bf16.msra.mxu1 %v3697_v11  ;;  %vm4873_vm4 = vmand %vm1053_vm13, %vm1060_vm5  ;;  %vm1054_vm13 = vcmp.le.s32.totalorder %v4746_v27, %v1021_v53 }
 0x1b8   : > { %3702 = vmatprep.subr.bf16.mxu1 %v3701_v20  ;;  %v5672_v32 = vsel %vm4873_vm4, 4294967295, %v5671_v32  ;;  %vm4912_vm2 = vmand %vm1054_vm13, %vm1060_vm5 }
 0x1b9   : > { %5673 = vst [vmem:[#allocation21_spill] sm:$0xff] %v5672_v32  ;;  %v5681_v2 = vsel %vm4912_vm2, 4294967295, %v5680_v2 }
 0x1ba   : > { %5682 = vst [vmem:[#allocation24_spill] sm:$0xff] %v5681_v2 }
 0x1bb   : > { %3704 = vmatpush3.bf16.msra.mxu1 %v3701_v20  ;;  %v1022_v20 = vadd.s32 88, %v4744_v26 }
 0x1bc   : > { %3707 = vmatprep.subr.msk.bf16.mxu1 %vm4537_vm3, %v4739_v24 }
 0x1bd   : > { %vm1055_vm1 = vcmp.le.s32.totalorder %v4746_v27, %v1022_v20 }
 0x1be   : > { %vm4903_vm14 = vmand %vm1055_vm1, %vm1060_vm5 }
 0x236   : > { %v3391_v39 = vpop.f32.mrb[16].mxu0 }
 0x237   : > { %v4773_v43 = vsel %vm4757_vm7, %v3391_v39, -inf  ;;  %v1240_v44 = vpop.f32.mrb[17].mxu0  ;;  %v1024_v39 = vadd.s32 104, %v4744_v26 }
 0x238   : > { %1336 = vst [vmem:[%s4403_s23 + $0x8] sm:$0xff] %v4773_v43  ;;  %v4779_v47 = vsel %vm4763_vm8, %v1240_v44, -inf  ;;  %1353 = vmax.xlane.f32.xlu0 %v4773_v43  ;;  %v1023_v44 = vadd.s32 96, %v4744_v26 }
 0x239   : > { %1335 = vst [vmem:[%s4403_s23] sm:$0xff] %v4779_v47 }
 0x23a   : > { %v3394_v54 = vpop.f32.mrb[18].mxu0  ;;  %vm1056_vm1 = vcmp.le.s32.totalorder %v4746_v27, %v1023_v44 }
 0x23b   : > { %v4802_v58 = vsel %vm4784_vm11, %v3394_v54, -inf  ;;  %v1250_v59 = vpop.f32.mrb[19].mxu0 }
 0x23c   : > { %1338 = vst [vmem:[%s4403_s23 + $0x18] sm:$0xff] %v4802_v58  ;;  %v4808_v62 = vsel %vm4792_vm12, %v1250_v59, -inf  ;;  %1351 = vmax.xlane.f32.xlu0 %v4779_v47  ;;  %1357 = vmax.xlane.f32.xlu1 %v4802_v58  ;;  %v5677_v59 = vmov 0 }
 0x23d   : > { %1337 = vst [vmem:[%s4403_s23 + $0x10] sm:$0xff] %v4808_v62  ;;  %v5678_v59 = vsel %vm4903_vm14, 4294967295, %v5677_v59 }
 0x23e   : > { %v3397_v5 = vpop.f32.mrb[20].mxu0  ;;  %5679 = vst [vmem:[#allocation23_spill] sm:$0xff] %v5678_v59 }
 0x23f   : > { %v4832_v9 = vsel %vm4814_vm15, %v3397_v5, -inf  ;;  %v1260_v11 = vpop.f32.mrb[21].mxu0  ;;  %v1026_v5 = vadd.s32 120, %v4744_v26 }
 0x240   : > { %1340 = vst [vmem:[%s4403_s23 + $0x28] sm:$0xff] %v4832_v9  ;;  %v4838_v13 = vsel %vm4822_vm0, %v1260_v11, -inf  ;;  %1355 = vmax.xlane.f32.xlu1 %v4808_v62  ;;  %v1025_v11 = vadd.s32 112, %v4744_v26  ;;  %v5686_v26 = vmov 0 }
 0x241   : > { %1339 = vst [vmem:[%s4403_s23 + $0x20] sm:$0xff] %v4838_v13  ;;  %1359 = vmax.xlane.f32.xlu0 %v4838_v13 }
 0x242   : > { %v3400_v23 = vpop.f32.mrb[22].mxu0 }
 0x243   : > { %v4862_v25 = vsel %vm4843_vm9, %v3400_v23, -inf  ;;  %v1270_v29 = vpop.f32.mrb[23].mxu0 }
 0x244   : > { %1342 = vst [vmem:[%s4403_s23 + $0x38] sm:$0xff] %v4862_v25  ;;  %v4868_v31 = vsel %vm4852_vm10, %v1270_v29, -inf  ;;  %1361 = vmax.xlane.f32.xlu1 %v4832_v9  ;;  %v5683_v29 = vmov 0 }
 0x245   : > { %1341 = vst [vmem:[%s4403_s23 + $0x30] sm:$0xff] %v4868_v31  ;;  %1363 = vmax.xlane.f32.xlu0 %v4868_v31 }
 0x246   : > { %v3403_v42 = vpop.f32.mrb[24].mxu0 }
 0x247   : > { %v4892_v50 = vsel %vm4873_vm4, %v3403_v42, -inf  ;;  %v1280_v54 = vpop.f32.mrb[25].mxu0  ;;  %vm1058_vm4 = vcmp.le.s32.totalorder %v4746_v27, %v1025_v11 }
 0x248   : > { %1344 = vst [vmem:[%s4403_s23 + $0x48] sm:$0xff] %v4892_v50  ;;  %v4898_v56 = vsel %vm4882_vm6, %v1280_v54, -inf  ;;  %1365 = vmax.xlane.f32.xlu1 %v4862_v25  ;;  %vm1057_vm6 = vcmp.le.s32.totalorder %v4746_v27, %v1024_v39 }
 0x249   : > { %1343 = vst [vmem:[%s4403_s23 + $0x40] sm:$0xff] %v4898_v56  ;;  %1367 = vmax.xlane.f32.xlu0 %v4898_v56  ;;  %vm4933_vm13 = vmand %vm1057_vm6, %vm1060_vm5 }
 0x24a   : > { %v3406_v8 = vpop.f32.mrb[26].mxu0  ;;  %v5684_v29 = vsel %vm4933_vm13, 4294967295, %v5683_v29 }
 0x24b   : > { %v4922_v20 = vsel %vm4903_vm14, %v3406_v8, -inf  ;;  %v1290_v23 = vpop.f32.mrb[27].mxu0  ;;  %5685 = vst [vmem:[#allocation25_spill] sm:$0xff] %v5684_v29  ;;  %vm4942_vm14 = vmand %vm1056_vm1, %vm1060_vm5  ;;  %v5692_v8 = vmov 0 }
 0x24c   : > { %1346 = vst [vmem:[%s4403_s23 + $0x58] sm:$0xff] %v4922_v20  ;;  %v4928_v53 = vsel %vm4912_vm2, %v1290_v23, -inf  ;;  %1369 = vmax.xlane.f32.xlu1 %v4892_v50  ;;  %v5687_v26 = vsel %vm4942_vm14, 4294967295, %v5686_v26  ;;  %vm1059_vm2 = vcmp.le.s32.totalorder %v4746_v27, %v1026_v5  ;;  %v5689_v5 = vmov 0  ;;  %vm4970_vm1 = vmand %vm1058_vm4, %vm1060_vm5 }
 0x24d   : > { %1345 = vst [vmem:[%s4403_s23 + $0x50] sm:$0xff] %v4928_v53  ;;  %1371 = vmax.xlane.f32.xlu0 %v4928_v53  ;;  %5688 = vst [vmem:[#allocation26_spill] sm:$0xff] %v5687_v26  ;;  %v5693_v8 = vsel %vm4970_vm1, 4294967295, %v5692_v8 }
 0x24e   : > { %v3409_v39 = vpop.f32.mrb[28].mxu0  ;;  %vm4961_vm6 = vmand %vm1059_vm2, %vm1060_vm5  ;;  %5694 = vst [vmem:[#allocation28_spill] sm:$0xff] %v5693_v8  ;;  %vm5695_vm2 = vcmask 64512  }
 0x24f   : > { %v4950_v42 = vsel %vm4933_vm13, %v3409_v39, -inf  ;;  %v1300_v44 = vpop.f32.mrb[29].mxu0  ;;  %v5690_v5 = vsel %vm4961_vm6, 4294967295, %v5689_v5  ;;  %vm5697_vm5 = vmmov %vm5695_vm2 }
 0x250   : > { %1348 = vst [vmem:[%s4403_s23 + $0x68] sm:$0xff] %v4950_v42  ;;  %v4956_v54 = vsel %vm4942_vm14, %v1300_v44, -inf  ;;  %1373 = vmax.xlane.f32.xlu1 %v4922_v20  ;;  %5691 = vst [vmem:[#allocation27_spill] sm:$0xff] %v5690_v5 }
 0x251   : > { %1347 = vst [vmem:[%s4403_s23 + $0x60] sm:$0xff] %v4956_v54  ;;  %1375 = vmax.xlane.f32.xlu0 %v4956_v54  ;;  %vm5698_vm4 = vmmov %vm5695_vm2 }
 0x252   : > { %v3412_v11 = vpop.f32.mrb[30].mxu0 }
 0x253   : > { %v4976_v23 = vsel %vm4961_vm6, %v3412_v11, -inf  ;;  %v1310_v39 = vpop.f32.mrb[31].mxu0 }
 0x254   : > { %1350 = vst [vmem:[%s4403_s23 + $0x78] sm:$0xff] %v4976_v23  ;;  %v4982_v44 = vsel %vm4970_vm1, %v1310_v39, -inf  ;;  %1377 = vmax.xlane.f32.xlu1 %v4950_v42  ;;  %vm5699_vm1 = vmmov %vm5695_vm2 }
 0x255   : > { %1349 = vst [vmem:[%s4403_s23 + $0x70] sm:$0xff] %v4982_v44  ;;  %1379 = vmax.xlane.f32.xlu0 %v4982_v44  ;;  %vm5700_vm6 = vmmov %vm5699_vm1 }
 0x258   : > { %1381 = vmax.xlane.f32.xlu1 %v4976_v23 }
 0x269   : > { %3948 = vrot.lane.b32.xlu1 %v4657_v45, %s4228_s29 }
 0x26b   : > { %3943 = vrot.lane.b32.xlu0 %v4633_v52, %s4228_s29 }
 0x2c5   : > { %v1354_v27 = vpop.xlane.xlu0 %1353 }
 0x2c6   : > { %v1384_v11 = vsub.f32 %v4773_v43, %v1354_v27 }
 0x2c8   : > { %v1401_v8 = vmul.f32 1.442695, %v1384_v11 }
 0x2c9   : > { %v1352_v39 = vpop.xlane.xlu0 %1351  ;;  %v1358_v5 = vpop.xlane.xlu1 %1357 }
 0x2ca   : > { %4002 = vpow2.f32 %v1401_v8  ;;  %v1383_v26 = vsub.f32 %v4779_v47, %v1352_v39  ;;  %v1386_v29 = vsub.f32 %v4802_v58, %v1358_v5 }
 0x2cc   : > { %v1399_v2 = vmul.f32 1.442695, %v1383_v26  ;;  %v1405_v36 = vmul.f32 1.442695, %v1386_v29 }
 0x2cd   : > { %v1356_v59 = vpop.xlane.xlu1 %1355 }
 0x2ce   : > { %4004 = vpow2.f32 %v1399_v2  ;;  %v1360_v32 = vpop.xlane.xlu0 %1359 }
 0x2cf   : > { %4006 = vpow2.f32 %v1405_v36 }
 0x2d1   : > { %v1362_v45 = vpop.xlane.xlu1 %1361 }
 0x2d2   : > { %v1364_v19 = vpop.xlane.xlu0 %1363 }
 0x2d3   : > { %v1389_v43 = vsub.f32 %v4868_v31, %v1364_v19 }
 0x2d4   : > { %v4996_v16 = vpop.eup %4002 }
 0x2d5   : > { %v1366_v0 = vpop.xlane.xlu1 %1365  ;;  %1433 = vadd.xlane.f32.xlu0 %v4996_v16  ;;  %v1411_v2 = vmul.f32 1.442695, %v1389_v43 }
 0x2d6   : > { %v1390_v8 = vsub.f32 %v4862_v25, %v1366_v0  ;;  %v1368_v29 = vpop.xlane.xlu0 %1367 }
 0x2d7   : > { %v1391_v19 = vsub.f32 %v4898_v56, %v1368_v29 }
 0x2d8   : > { %v5001_v47 = vpop.eup %4004  ;;  %v1413_v58 = vmul.f32 1.442695, %v1390_v8  ;;  %v1385_v8 = vsub.f32 %v4808_v62, %v1356_v59 }
 0x2d9   : > { %v1370_v26 = vpop.xlane.xlu1 %1369  ;;  %1431 = vadd.xlane.f32.xlu1 %v5001_v47  ;;  %v5005_v5 = vpop.eup %4006  ;;  %v1415_v25 = vmul.f32 1.442695, %v1391_v19 }
 0x2da   : > { %4008 = vpow2.f32 %v1413_v58  ;;  %v1392_v36 = vsub.f32 %v4892_v50, %v1370_v26  ;;  %v1403_v58 = vmul.f32 1.442695, %v1385_v8  ;;  %v1388_v26 = vsub.f32 %v4832_v9, %v1362_v45  ;;  %v1372_v29 = vpop.xlane.xlu0 %1371 }
 0x2db   : > { %4010 = vpow2.f32 %v1411_v2  ;;  %v1387_v2 = vsub.f32 %v4838_v13, %v1360_v32 }
 0x2dc   : > { %v1417_v31 = vmul.f32 1.442695, %v1392_v36  ;;  %v1409_v36 = vmul.f32 1.442695, %v1388_v26 }
 0x2dd   : > { %1437 = vadd.xlane.f32.xlu1 %v5005_v5  ;;  %v1374_v0 = vpop.xlane.xlu1 %1373  ;;  %v1407_v19 = vmul.f32 1.442695, %v1387_v2 }
 0x2de   : > { %4012 = vpow2.f32 %v1417_v31  ;;  %v1394_v27 = vsub.f32 %v4922_v20, %v1374_v0  ;;  %v1393_v31 = vsub.f32 %v4928_v53, %v1372_v29  ;;  %v1376_v59 = vpop.xlane.xlu0 %1375 }
 0x2df   : > { %4014 = vpow2.f32 %v1415_v25  ;;  %v1395_v45 = vsub.f32 %v4956_v54, %v1376_v59 }
 0x2e0   : > { %v1421_v50 = vmul.f32 1.442695, %v1394_v27  ;;  %v1419_v25 = vmul.f32 1.442695, %v1393_v31 }
 0x2e1   : > { %v1378_v0 = vpop.xlane.xlu1 %1377  ;;  %v1423_v32 = vmul.f32 1.442695, %v1395_v45 }
 0x2e2   : > { %4016 = vpow2.f32 %v1421_v50  ;;  %v1396_v62 = vsub.f32 %v4950_v42, %v1378_v0  ;;  %v1380_v54 = vpop.xlane.xlu0 %1379 }
 0x2e3   : > { %4018 = vpow2.f32 %v1403_v58  ;;  %v1397_v58 = vsub.f32 %v4982_v44, %v1380_v54 }
 0x2e4   : > { %v5010_v11 = vpop.eup %4008  ;;  %4020 = vpow2.f32 %v1409_v36  ;;  %v1425_v9 = vmul.f32 1.442695, %v1396_v62 }
 0x2e5   : > { %1445 = vadd.xlane.f32.xlu1 %v5010_v11  ;;  %v5013_v39 = vpop.eup %4010  ;;  %4022 = vpow2.f32 %v1407_v19  ;;  %v1382_v53 = vpop.xlane.xlu1 %1381  ;;  %v1427_v36 = vmul.f32 1.442695, %v1397_v58 }
 0x2e6   : > { %4024 = vpow2.f32 %v1419_v25  ;;  %v1398_v50 = vsub.f32 %v4976_v23, %v1382_v53 }
 0x2e7   : > { %4026 = vpow2.f32 %v1425_v9 }
 0x2e8   : > { %v5018_v56 = vpop.eup %4012  ;;  %4028 = vpow2.f32 %v1423_v32  ;;  %v1429_v26 = vmul.f32 1.442695, %v1398_v50 }
 0x2e9   : > { %1443 = vadd.xlane.f32.xlu1 %v5013_v39  ;;  %v5021_v43 = vpop.eup %4014 }
 0x2ea   : > { %4030 = vpow2.f32 %v1429_v26 }
 0x2eb   : > { %3953 = vrot.lane.b32.xlu0 %v4669_v12, %s4228_s29  ;;  %4032 = vpow2.f32 %v1427_v36 }
 0x2ec   : > { %v5024_v20 = vpop.eup %4016 }
 0x2ed   : > { %1449 = vadd.xlane.f32.xlu1 %v5018_v56  ;;  %v5034_v27 = vpop.eup %4018 }
 0x2ee   : > { %v5038_v13 = vpop.eup %4020 }
 0x2f1   : > { %1447 = vadd.xlane.f32.xlu1 %v5021_v43 }
 0x2f5   : > { %1453 = vadd.xlane.f32.xlu1 %v5024_v20 }
 0x306   : > { %1690 = vrot.lane.b32.xlu1 %v4524_v57, %s4227_s28  ;;  %v5041_v57 = vpop.eup %4022 }
 0x307   : > { %v5044_v42 = vpop.eup %4024 }
 0x308   : > { %v5048_v8 = vpop.eup %4026 }
 0x309   : > { %v5052_v2 = vpop.eup %4028 }
 0x30a   : > { %1435 = vadd.xlane.f32.xlu0 %v5034_v27  ;;  %v5055_v29 = vpop.eup %4030 }
 0x30b   : > { %v5058_v23 = vpop.eup %4032 }
 0x30e   : > { %1441 = vadd.xlane.f32.xlu0 %v5038_v13 }
 0x312   : > { %1439 = vadd.xlane.f32.xlu0 %v5041_v57 }
 0x316   : > { %1451 = vadd.xlane.f32.xlu0 %v5044_v42 }
 0x31a   : > { %1457 = vadd.xlane.f32.xlu0 %v5048_v8 }
 0x31e   : > { %1455 = vadd.xlane.f32.xlu0 %v5052_v2 }
 0x32a   : > { %1461 = vadd.xlane.f32.xlu1 %v5055_v29 }
 0x32e   : > { %1459 = vadd.xlane.f32.xlu1 %v5058_v23 }
 0x334   : > { %3958 = vrot.lane.b32.xlu0 %v4685_v21, %s4228_s29 }
 0x338   : > { %1688 = vrot.lane.b32.xlu0 %v4528_v61, %s4227_s28  ;;  %v3944_v61 = vpop.permute.xlu0 %3943 }
 0x33c   : > { %1692 = vrot.lane.b32.xlu0 %v4552_v10, %s4227_s28 }
 0x33f   : > { %1694 = vrot.lane.b32.xlu1 %v4548_v6, %s4227_s28  ;;  %v3949_v6 = vpop.permute.xlu1 %3948 }
 0x340   : > { %1696 = vrot.lane.b32.xlu0 %v4574_v22, %s4227_s28 }
 0x343   : > { %1698 = vrot.lane.b32.xlu1 %v4570_v18, %s4227_s28 }
 0x344   : > { %1700 = vrot.lane.b32.xlu0 %v4596_v34, %s4227_s28 }
 0x347   : > { %1702 = vrot.lane.b32.xlu1 %v4592_v30, %s4227_s28  ;;  %v3901_v30 = vunpack.i.h.bf16 %v4733_v37 }
 0x348   : > { %1704 = vrot.lane.b32.xlu0 %v4620_v46, %s4227_s28  ;;  %v3910_v46 = vunpack.i.l.bf16 %v4735_v38 }
 0x34b   : > { %1706 = vrot.lane.b32.xlu1 %v4616_v41, %s4227_s28  ;;  %v3911_v41 = vunpack.i.h.bf16 %v4735_v38 }
 0x34c   : > { %1708 = vrot.lane.b32.xlu0 %v4640_v60, %s4227_s28  ;;  %v3920_v60 = vunpack.i.l.bf16 %v4737_v51 }
 0x34f   : > { %1710 = vrot.lane.b32.xlu1 %v4636_v55, %s4227_s28  ;;  %v3921_v55 = vunpack.i.h.bf16 %v4737_v51  ;;  %v3950_v51 = vunpack.i.l.bf16 %v3949_v6 }
 0x350   : > { %1712 = vrot.lane.b32.xlu0 %v4663_v7, %s4227_s28  ;;  %v3946_v7 = vunpack.i.h.bf16 %v3944_v61 }
 0x353   : > { %1714 = vrot.lane.b32.xlu1 %v4660_v4, %s4227_s28  ;;  %v3723_v4 = vpack.c.bf16 %v3921_v55, %v3920_v60 }
 0x354   : > { %1716 = vrot.lane.b32.xlu0 %v4675_v17, %s4227_s28 }
 0x357   : > { %1718 = vrot.lane.b32.xlu1 %v4672_v14, %s4227_s28  ;;  %v3945_v14 = vunpack.i.l.bf16 %v3944_v61 }
 0x358   : > { %3963 = vrot.lane.b32.xlu0 %v4545_v3, %s4229_s18 }
 0x35b   : > { %3968 = vrot.lane.b32.xlu1 %v4567_v15, %s4229_s18  ;;  %v3900_v15 = vunpack.i.l.bf16 %v4733_v37  ;;  %v3729_v37 = vpack.c.bf16 %v3946_v7, %v3945_v14 }
 0x35c   : > { %3973 = vrot.lane.b32.xlu0 %v4589_v28, %s4229_s18 }
 0x35f   : > { %3978 = vrot.lane.b32.xlu1 %v4613_v40, %s4229_s18  ;;  %v3711_v40 = vpack.c.bf16 %v3901_v30, %v3900_v15 }
 0x360   : > { %3983 = vrot.lane.b32.xlu0 %v4633_v52, %s4229_s18  ;;  %v3717_v52 = vpack.c.bf16 %v3911_v41, %v3910_v46 }
 0x362   : > { %v1434_v10 = vpop.xlane.xlu0 %1433 }
 0x363   : > { %4034 = vrcp.f32 %v1434_v10 }
 0x366   : > { %v1432_v18 = vpop.xlane.xlu1 %1431 }
 0x367   : > { %4036 = vrcp.f32 %v1432_v18 }
 0x36a   : > { %v1438_v17 = vpop.xlane.xlu1 %1437 }
 0x36b   : > { %4038 = vrcp.f32 %v1438_v17 }
 0x36d   : > { %v4035_v22 = vpop.eup %4034 }
 0x36e   : > { %v1480_v34 = vmul.f32 %v4035_v22, %v4996_v16  ;;  %v3954_v16 = vpop.permute.xlu0 %3953 }
 0x36f   : > { %v3956_v31 = vunpack.i.h.bf16 %v3954_v16  ;;  %v3955_v0 = vunpack.i.l.bf16 %v3954_v16 }
 0x371   : > { %v4037_v3 = vpop.eup %4036  ;;  %v3741_v59 = vpack.c.bf16 %v3956_v31, %v3955_v0 }
 0x372   : > { %v1479_v28 = vmul.f32 %v4037_v3, %v5001_v47  ;;  %v1446_v38 = vpop.xlane.xlu1 %1445 }
 0x374   : > { %3445 = vmatprep.mubr.f32.mxu1 %v1479_v28 }
 0x375   : > { %3446 = vmatmul.mubr.f32.vlgmr.msra.gmra.mrb[16].mxu1 %v1480_v34  ;;  %v4039_v9 = vpop.eup %4038 }
 0x376   : > { %3710 = vmatpush3.bf16.xpose.msk.msra.mxu1 %vm4537_vm3, %v4739_v24  ;;  %v3951_v24 = vunpack.i.h.bf16 %v3949_v6  ;;  %v1444_v47 = vpop.xlane.xlu1 %1443  ;;  %v1482_v58 = vmul.f32 %v4039_v9, %v5005_v5 }
 0x377   : > { %3713 = vmatprep.subr.msk.bf16.mxu1 %vm4537_vm3, %v3711_v40 }
 0x378   : > { %v3735_v44 = vpack.c.bf16 %v3951_v24, %v3950_v51 }
 0x37a   : > { %v1450_v25 = vpop.xlane.xlu1 %1449 }
 0x37e   : > { %3716 = vmatpush3.bf16.xpose.msk.msra.mxu1 %vm4537_vm3, %v3711_v40  ;;  %v1448_v32 = vpop.xlane.xlu1 %1447 }
 0x37f   : > { %3719 = vmatprep.subr.msk.bf16.mxu1 %vm4537_vm3, %v3717_v52 }
 0x382   : > { %v1454_v61 = vpop.xlane.xlu1 %1453 }
 0x386   : > { %3722 = vmatpush3.bf16.xpose.msk.msra.mxu1 %vm4537_vm3, %v3717_v52 }
 0x387   : > { %3725 = vmatprep.subr.msk.bf16.mxu1 %vm4537_vm3, %v3723_v4 }
 0x38e   : > { %3728 = vmatpush3.bf16.xpose.msk.msra.mxu1 %vm4537_vm3, %v3723_v4 }
 0x38f   : > { %3731 = vmatprep.subr.msk.bf16.mxu1 %vm4537_vm3, %v3729_v37 }
 0x396   : > { %3734 = vmatpush3.bf16.xpose.msk.msra.mxu1 %vm4537_vm3, %v3729_v37 }
 0x397   : > { %3737 = vmatprep.subr.msk.bf16.mxu1 %vm4537_vm3, %v3735_v44  ;;  %v1436_v19 = vpop.xlane.xlu0 %1435 }
 0x398   : > { %4040 = vrcp.f32 %v1436_v19 }
 0x399   : > { %4042 = vrcp.f32 %v1444_v47 }
 0x39b   : > { %v1442_v62 = vpop.xlane.xlu0 %1441 }
 0x39c   : > { %4044 = vrcp.f32 %v1442_v62 }
 0x39e   : > { %3740 = vmatpush3.bf16.xpose.msk.msra.mxu1 %vm4537_vm3, %v3735_v44 }
 0x39f   : > { %3743 = vmatprep.subr.msk.bf16.mxu1 %vm4537_vm3, %v3741_v59  ;;  %v1440_v45 = vpop.xlane.xlu0 %1439 }
 0x3a0   : > { %4046 = vrcp.f32 %v1440_v45 }
 0x3a1   : > { %4048 = vrcp.f32 %v1446_v38 }
 0x3a2   : > { %v4041_v53 = vpop.eup %4040  ;;  %4050 = vrcp.f32 %v1448_v32 }
 0x3a3   : > { %v1452_v50 = vpop.xlane.xlu0 %1451  ;;  %v1481_v54 = vmul.f32 %v4041_v53, %v5034_v27  ;;  %4052 = vrcp.f32 %v1450_v25  ;;  %v4043_v36 = vpop.eup %4042 }
 0x3a4   : > { %4054 = vrcp.f32 %v1452_v50  ;;  %v1485_v5 = vmul.f32 %v4043_v36, %v5013_v39 }
 0x3a5   : > { %3448 = vmatprep.mubr.f32.mxu1 %v1481_v54  ;;  %4056 = vrcp.f32 %v1454_v61 }
 0x3a6   : > { %3746 = vmatpush3.bf16.xpose.msk.msra.mxu1 %vm4537_vm3, %v3741_v59  ;;  %v4045_v6 = vpop.eup %4044 }
 0x3a7   : > { %3449 = vmatmul.mubr.f32.gmra.mrb[18].mxu1 %v1482_v58  ;;  %v1458_v26 = vpop.xlane.xlu0 %1457  ;;  %v1484_v27 = vmul.f32 %v4045_v6, %v5038_v13  ;;  %v1691_v13 = vpop.permute.xlu1 %1690 }
 0x3aa   : > { %v4047_v10 = vpop.eup %4046 }
 0x3ab   : > { %v1456_v18 = vpop.xlane.xlu0 %1455  ;;  %v1483_v22 = vmul.f32 %v4047_v10, %v5041_v57  ;;  %v4049_v3 = vpop.eup %4048 }
 0x3ac   : > { %4058 = vrcp.f32 %v1456_v18  ;;  %v4051_v30 = vpop.eup %4050  ;;  %v1486_v40 = vmul.f32 %v4049_v3, %v5010_v11 }
 0x3ad   : > { %3451 = vmatprep.mubr.f32.mxu1 %v1483_v22  ;;  %4060 = vrcp.f32 %v1458_v26  ;;  %v4053_v41 = vpop.eup %4052  ;;  %v1487_v46 = vmul.f32 %v4051_v30, %v5021_v43 }
 0x3ae   : > { %3452 = vmatmul.mubr.f32.gmra.mrb[20].mxu1 %v1484_v27  ;;  %v4055_v57 = vpop.eup %4054  ;;  %v1488_v39 = vmul.f32 %v4053_v41, %v5018_v56 }
 0x3af   : > { %3454 = vmatprep.mubr.f32.mxu1 %v1485_v5  ;;  %v3959_v15 = vpop.permute.xlu0 %3958  ;;  %v4057_v60 = vpop.eup %4056  ;;  %v1489_v11 = vmul.f32 %v4055_v57, %v5044_v42 }
 0x3b0   : > { %v3961_v28 = vunpack.i.h.bf16 %v3959_v15  ;;  %v3960_v34 = vunpack.i.l.bf16 %v3959_v15  ;;  %v1490_v14 = vmul.f32 %v4057_v60, %v5024_v20 }
 0x3b2   : > { %v3747_v52 = vpack.c.bf16 %v3961_v28, %v3960_v34  ;;  %3455 = vmatmul.mubr.f32.gmra.mrb[22].mxu1 %v1486_v40 }
 0x3b3   : > { %3457 = vmatprep.mubr.f32.mxu1 %v1487_v46  ;;  %v1689_v55 = vpop.permute.xlu0 %1688 }
 0x3b4   : > { %3749 = vmatprep.subr.msk.bf16.mxu1 %vm4537_vm3, %v3747_v52 }
 0x3b5   : > { %3752 = vmatpush3.bf16.xpose.msk.msra.mxu1 %vm4537_vm3, %v3747_v52  ;;  %vm5696_vm3 = vmmov %vm5695_vm2 }
 0x3b6   : > { %v4059_v4 = vpop.eup %4058  ;;  %3458 = vmatmul.mubr.f32.gmra.mrb[24].mxu1 %v1488_v39 }
 0x3b7   : > { %v1462_v43 = vpop.xlane.xlu1 %1461  ;;  %3460 = vmatprep.mubr.f32.mxu1 %v1489_v11  ;;  %v1693_v7 = vpop.permute.xlu0 %1692  ;;  %v1491_v37 = vmul.f32 %v4059_v4, %v5052_v2 }
 0x3b8   : > { %v4061_v17 = vpop.eup %4060  ;;  %4062 = vrcp.f32 %v1462_v43 }
 0x3b9   : > { %v1492_v1 = vmul.f32 %v4061_v17, %v5048_v8 }
 0x3ba   : > { %3461 = vmatmul.mubr.f32.gmra.mrb[26].mxu1 %v1490_v14 }
 0x3bb   : > { %v1460_v38 = vpop.xlane.xlu1 %1459  ;;  %3463 = vmatprep.mubr.f32.mxu1 %v1491_v37  ;;  %v1697_v56 = vpop.permute.xlu0 %1696 }
 0x3bc   : > { %4064 = vrcp.f32 %v1460_v38 }
 0x3be   : > { %3464 = vmatmul.mubr.f32.gmra.mrb[28].mxu1 %v1492_v1 }
 0x3bf   : > { %v1695_v42 = vpop.permute.xlu1 %1694  ;;  %v1701_v24 = vpop.permute.xlu0 %1700 }
 0x3c2   : > { %v4063_v44 = vpop.eup %4062 }
 0x3c3   : > { %v1699_v51 = vpop.permute.xlu1 %1698  ;;  %v1705_v16 = vpop.permute.xlu0 %1704  ;;  %v1494_v2 = vmul.f32 %v4063_v44, %v5055_v29 }
 0x3c6   : > { %v4065_v47 = vpop.eup %4064 }
 0x3c7   : > { %v1703_v19 = vpop.permute.xlu1 %1702  ;;  %v1709_v20 = vpop.permute.xlu0 %1708  ;;  %v1493_v31 = vmul.f32 %v4065_v47, %v5058_v23 }
 0x3c9   : > { %3466 = vmatprep.mubr.f32.mxu1 %v1493_v31 }
 0x3ca   : > { %3467 = vmatmul.mubr.f32.gmra.mrb[30].mxu1 %v1494_v2 }
 0x3cb   : > { %v1707_v0 = vpop.permute.xlu1 %1706  ;;  %3501 = vmatprep.mubr.msk.f32.mxu1 %vm5695_vm2, %v1689_v55  ;;  %v1713_v25 = vpop.permute.xlu0 %1712  ;;  %vm5701_vm2 = vmmov %vm5699_vm1 }
 0x3ce   : > { %3502 = vmatmul.mubr.msk.f32.vlgmr.msra.gmra.mrb[32].mxu1 %vm5696_vm3, %v1691_v13  ;;  %vm5702_vm3 = vmmov %vm5699_vm1 }
 0x3cf   : > { %v1711_v8 = vpop.permute.xlu1 %1710  ;;  %v1717_v62 = vpop.permute.xlu0 %1716  ;;  %3504 = vmatprep.mubr.msk.f32.mxu1 %vm5697_vm5, %v1693_v7  ;;  %vm5703_vm5 = vmmov %vm5699_vm1 }
 0x3d2   : > { %3505 = vmatmul.mubr.msk.f32.gmra.mrb[34].mxu1 %vm5698_vm4, %v1695_v42  ;;  %vm5705_vm4 = vmmov %vm5699_vm1 }
 0x3d3   : > { %v1715_v59 = vpop.permute.xlu1 %1714  ;;  %v3964_v45 = vpop.permute.xlu0 %3963  ;;  %3507 = vmatprep.mubr.msk.f32.mxu1 %vm5699_vm1, %v1697_v56 }
 0x3d4   : > { %v3966_v23 = vunpack.i.h.bf16 %v3964_v45  ;;  %v3965_v29 = vunpack.i.l.bf16 %v3964_v45 }
 0x3d6   : > { %v3753_v9 = vpack.c.bf16 %v3966_v23, %v3965_v29  ;;  %3508 = vmatmul.mubr.msk.f32.gmra.mrb[36].mxu1 %vm5700_vm6, %v1699_v51  ;;  %vm5704_vm6 = vmmov %vm5699_vm1  ;;  %v5716_v23 = vld [vmem:[#allocation23_spill] sm:$0xff] }
 0x3d7   : > { %v1719_v32 = vpop.permute.xlu1 %1718  ;;  %3510 = vmatprep.mubr.msk.f32.mxu1 %vm5701_vm2, %v1701_v24  ;;  %v3974_v53 = vpop.permute.xlu0 %3973  ;;  %vm5706_vm2 = vmmov %vm5699_vm1 }
 0x3d8   : > { %3754 = vmatprep.subr.bf16.mxu0 %v3753_v9  ;;  %3789 = vmatprep.subr.bf16.mxu1 %v3753_v9  ;;  %v3976_v54 = vunpack.i.h.bf16 %v3974_v53  ;;  %v3975_v58 = vunpack.i.l.bf16 %v3974_v53 }
 0x3d9   : > { %3756 = vmatpush3.bf16.msra.mxu0 %v3753_v9  ;;  %3797 = vmatpush3.bf16.msra.mxu1 %v3753_v9 }
 0x3da   : > { %3511 = vmatmul.mubr.msk.f32.gmra.mrb[38].mxu1 %vm5702_vm3, %v1703_v19  ;;  %v3761_v10 = vpack.c.bf16 %v3976_v54, %v3975_v58  ;;  %vm5707_vm3 = vmmov %vm5699_vm1 }
 0x3db   : > { %v3969_v50 = vpop.permute.xlu1 %3968  ;;  %3513 = vmatprep.mubr.msk.f32.mxu1 %vm5703_vm5, %v1705_v16  ;;  %v3984_v27 = vpop.permute.xlu0 %3983  ;;  %vm5708_vm5 = vmmov %vm5699_vm1 }
 0x3dc   : > { %v3971_v26 = vunpack.i.h.bf16 %v3969_v50  ;;  %v3970_v36 = vunpack.i.l.bf16 %v3969_v50  ;;  %v3986_v3 = vunpack.i.h.bf16 %v3984_v27  ;;  %v3985_v5 = vunpack.i.l.bf16 %v3984_v27  ;;  %v5724_v27 = vld [vmem:[#allocation28_spill] sm:$0xff] }
 0x3de   : > { %v3757_v61 = vpack.c.bf16 %v3971_v26, %v3970_v36  ;;  %3514 = vmatmul.mubr.msk.f32.gmra.mrb[40].mxu1 %vm5699_vm1, %v1707_v0  ;;  %v3769_v15 = vpack.c.bf16 %v3986_v3, %v3985_v5  ;;  %v5712_v0 = vld [vmem:[#allocation21_spill] sm:$0xff] }
 0x3df   : > { %v3979_v6 = vpop.permute.xlu1 %3978  ;;  %3516 = vmatprep.mubr.msk.f32.mxu1 %vm5704_vm6, %v1709_v20  ;;  %v5726_v5 = vld [vmem:[#allocation17_spill] sm:$0xff]  ;;  %vm5730_vm6 = vmmov %vm5699_vm1 }
 0x3e0   : > { %v3981_v18 = vunpack.i.h.bf16 %v3979_v6  ;;  %v3980_v22 = vunpack.i.l.bf16 %v3979_v6  ;;  %3758 = vmatprep.subr.bf16.mxu0 %v3757_v61  ;;  %3790 = vmatprep.subr.bf16.mxu1 %v3757_v61 }
 0x3e1   : > { %3760 = vmatpush3.bf16.msra.mxu0 %v3757_v61  ;;  %3798 = vmatpush3.bf16.msra.mxu1 %v3757_v61 }
 0x3e2   : > { %3517 = vmatmul.mubr.msk.f32.gmra.mrb[42].mxu1 %vm5705_vm4, %v1711_v8  ;;  %3762 = vmatprep.subr.bf16.mxu0 %v3761_v10  ;;  %v3765_v30 = vpack.c.bf16 %v3981_v18, %v3980_v22  ;;  %vm5731_vm4 = vmmov %vm5699_vm1 }
 0x3e3   : > { %3791 = vmatprep.subr.bf16.mxu1 %v3761_v10  ;;  %3519 = vmatprep.mubr.msk.f32.mxu1 %vm5706_vm2, %v1713_v25  ;;  %vm5732_vm2 = vmmov %vm5699_vm1 }
 0x3e5   : > { %3764 = vmatpush3.bf16.msra.mxu0 %v3761_v10  ;;  %3799 = vmatpush3.bf16.msra.mxu1 %v3761_v10  ;;  %v5722_v10 = vld [vmem:[#allocation27_spill] sm:$0xff] }
 0x3e6   : > { %3520 = vmatmul.mubr.msk.f32.gmra.mrb[44].mxu1 %vm5707_vm3, %v1715_v59  ;;  %3766 = vmatprep.subr.bf16.mxu0 %v3765_v30  ;;  %vm5733_vm3 = vmmov %vm5699_vm1 }
 0x3e7   : > { %3792 = vmatprep.subr.bf16.mxu1 %v3765_v30  ;;  %3522 = vmatprep.mubr.msk.f32.mxu1 %vm5708_vm5, %v1717_v62  ;;  %v5714_v62 = vld [vmem:[#allocation22_spill] sm:$0xff]  ;;  %vm5734_vm5 = vmmov %vm5699_vm1 }
 0x3e9   : > { %3768 = vmatpush3.bf16.msra.mxu0 %v3765_v30  ;;  %3800 = vmatpush3.bf16.msra.mxu1 %v3765_v30 }
 0x3ea   : > { %3523 = vmatmul.mubr.msk.f32.gmra.mrb[46].mxu1 %vm5699_vm1, %v1719_v32  ;;  %3770 = vmatprep.subr.bf16.mxu0 %v3769_v15  ;;  %v5718_v32 = vld [vmem:[#allocation24_spill] sm:$0xff] }
 0x3eb   : > { %3793 = vmatprep.subr.bf16.mxu1 %v3769_v15 }
 0x3ed   : > { %3772 = vmatpush3.bf16.msra.mxu0 %v3769_v15  ;;  %3801 = vmatpush3.bf16.msra.mxu1 %v3769_v15 }
 0x448   : > { %v5172_v28 = vpop.f32.mrb[16].mxu1 }
 0x449   : > { %v5174_v34 = vpop.f32.mrb[17].mxu1 }
 0x47a   : > { %v5176_v40 = vpop.f32.mrb[18].mxu1 }
 0x47b   : > { %v5178_v41 = vpop.f32.mrb[19].mxu1 }
 0x481   : > { %v5180_v46 = vpop.f32.mrb[20].mxu1 }
 0x482   : > { %v5182_v57 = vpop.f32.mrb[21].mxu1 }
 0x485   : > { %v5184_v52 = vpop.f32.mrb[22].mxu1 }
 0x486   : > { %v5186_v13 = vpop.f32.mrb[23].mxu1 }
 0x489   : > { %v5188_v55 = vpop.f32.mrb[24].mxu1 }
 0x48a   : > { %v5190_v39 = vpop.f32.mrb[25].mxu1 }
 0x48d   : > { %v5192_v60 = vpop.f32.mrb[26].mxu1 }
 0x48e   : > { %v5194_v11 = vpop.f32.mrb[27].mxu1 }
 0x491   : > { %v5196_v4 = vpop.f32.mrb[28].mxu1 }
 0x492   : > { %v5198_v43 = vpop.f32.mrb[29].mxu1 }
 0x49d   : > { %v5200_v7 = vpop.f32.mrb[30].mxu1 }
 0x49e   : > { %v5202_v14 = vpop.f32.mrb[31].mxu1 }
 0x4a1   : > { %v3503_v17 = vpop.f32.mrb[32].mxu1 }
 0x4a2   : > { %v5206_v37 = vsel %vm4757_vm7, %v3503_v17, -inf  ;;  %v1882_v38 = vpop.f32.mrb[33].mxu1  ;;  %vm5713_vm7 = vnez %v5712_v0 }
 0x4a3   : > { %3060 = vst [vmem:[%s4403_s23 + $0x88] sm:$0xff] %v5206_v37  ;;  %v5212_v56 = vsel %vm4763_vm8, %v1882_v38, -inf  ;;  %1996 = vmax.xlane.f32.xlu1 %v5206_v37  ;;  %vm5715_vm8 = vnez %v5714_v62 }
 0x4a4   : > { %3059 = vst [vmem:[%s4403_s23 + $0x80] sm:$0xff] %v5212_v56  ;;  %1994 = vmax.xlane.f32.xlu0 %v5212_v56 }
 0x4a5   : > { %v3506_v1 = vpop.f32.mrb[34].mxu1 }
 0x4a6   : > { %v5220_v33 = vsel %vm4784_vm11, %v3506_v1, -inf  ;;  %v1892_v42 = vpop.f32.mrb[35].mxu1  ;;  %vm5717_vm11 = vnez %v5716_v23 }
 0x4a7   : > { %3062 = vst [vmem:[%s4403_s23 + $0x98] sm:$0xff] %v5220_v33  ;;  %v5226_v35 = vsel %vm4792_vm12, %v1892_v42, -inf  ;;  %vm5719_vm12 = vnez %v5718_v32 }
 0x4a8   : > { %3061 = vst [vmem:[%s4403_s23 + $0x90] sm:$0xff] %v5226_v35  ;;  %2000 = vmax.xlane.f32.xlu0 %v5220_v33 }
 0x4a9   : > { %v3509_v24 = vpop.f32.mrb[36].mxu1 }
 0x4aa   : > { %v5233_v51 = vsel %vm4814_vm15, %v3509_v24, -inf  ;;  %v1902_v48 = vpop.f32.mrb[37].mxu1  ;;  %vm5723_vm15 = vnez %v5722_v10 }
 0x4ab   : > { %3064 = vst [vmem:[%s4403_s23 + $0xa8] sm:$0xff] %v5233_v51  ;;  %v5239_v44 = vsel %vm4822_vm0, %v1902_v48, -inf  ;;  %2004 = vmax.xlane.f32.xlu1 %v5233_v51  ;;  %vm5725_vm0 = vnez %v5724_v27 }
 0x4ac   : > { %3063 = vst [vmem:[%s4403_s23 + $0xa0] sm:$0xff] %v5239_v44  ;;  %1998 = vmax.xlane.f32.xlu0 %v5226_v35 }
 0x4ad   : > { %v3512_v49 = vpop.f32.mrb[38].mxu1 }
 0x4ae   : > { %v5247_v63 = vsel %vm4843_vm9, %v3512_v49, -inf  ;;  %v1912_v19 = vpop.f32.mrb[39].mxu1  ;;  %vm2429_vm9 = vcmask 130048  }
 0x4af   : > { %3066 = vst [vmem:[%s4403_s23 + $0xb8] sm:$0xff] %v5247_v63  ;;  %v5253_v31 = vsel %vm4852_vm10, %v1912_v19, -inf  ;;  %2008 = vmax.xlane.f32.xlu1 %v5247_v63  ;;  %vm5727_vm10 = vmmov %vm5699_vm1 }
 0x4b0   : > { %3065 = vst [vmem:[%s4403_s23 + $0xb0] sm:$0xff] %v5253_v31  ;;  %2002 = vmax.xlane.f32.xlu0 %v5239_v44 }
 0x4b1   : > { %v3515_v2 = vpop.f32.mrb[40].mxu1 }
 0x4b2   : > { %v5261_v25 = vsel %vm5713_vm7, %v3515_v2, -inf  ;;  %v1922_v8 = vpop.f32.mrb[41].mxu1  ;;  %vm5735_vm7 = vmmov %vm5699_vm1 }
 0x4b3   : > { %3068 = vst [vmem:[%s4403_s23 + $0xc8] sm:$0xff] %v5261_v25  ;;  %v5267_v59 = vsel %vm5715_vm8, %v1922_v8, -inf  ;;  %2012 = vmax.xlane.f32.xlu1 %v5261_v25  ;;  %vm5736_vm8 = vmmov %vm5699_vm1 }
 0x4b4   : > { %3067 = vst [vmem:[%s4403_s23 + $0xc0] sm:$0xff] %v5267_v59  ;;  %2006 = vmax.xlane.f32.xlu0 %v5253_v31 }
 0x4b5   : > { %v3518_v45 = vpop.f32.mrb[42].mxu1 }
 0x4b6   : > { %v5275_v29 = vsel %vm5717_vm11, %v3518_v45, -inf  ;;  %v1932_v9 = vpop.f32.mrb[43].mxu1  ;;  %vm5737_vm11 = vmmov %vm5699_vm1 }
 0x4b7   : > { %3070 = vst [vmem:[%s4403_s23 + $0xd8] sm:$0xff] %v5275_v29  ;;  %v5281_v53 = vsel %vm5719_vm12, %v1932_v9, -inf  ;;  %2016 = vmax.xlane.f32.xlu1 %v5275_v29  ;;  %vm5738_vm12 = vmmov %vm5699_vm1 }
 0x4b8   : > { %3069 = vst [vmem:[%s4403_s23 + $0xd0] sm:$0xff] %v5281_v53  ;;  %2010 = vmax.xlane.f32.xlu0 %v5267_v59 }
 0x4b9   : > { %v3521_v50 = vpop.f32.mrb[44].mxu1 }
 0x4ba   : > { %v5289_v58 = vsel %vm4933_vm13, %v3521_v50, -inf  ;;  %v1942_v26 = vpop.f32.mrb[45].mxu1  ;;  %vm5729_vm13 = vmmov %vm5699_vm1 }
 0x4bb   : > { %3072 = vst [vmem:[%s4403_s23 + $0xe8] sm:$0xff] %v5289_v58  ;;  %v5295_v61 = vsel %vm4942_vm14, %v1942_v26, -inf  ;;  %2020 = vmax.xlane.f32.xlu1 %v5289_v58  ;;  %vm5728_vm14 = vmmov %vm5699_vm1 }
 0x4bc   : > { %3071 = vst [vmem:[%s4403_s23 + $0xe0] sm:$0xff] %v5295_v61  ;;  %2014 = vmax.xlane.f32.xlu0 %v5281_v53 }
 0x4bd   : > { %v3524_v6 = vpop.f32.mrb[46].mxu1 }
 0x4be   : > { %v5303_v18 = vsel %vm5723_vm15, %v3524_v6, -inf  ;;  %v1952_v22 = vpop.f32.mrb[47].mxu1  ;;  %vm5739_vm15 = vmmov %vm5699_vm1 }
 0x4bf   : > { %3074 = vst [vmem:[%s4403_s23 + $0xf8] sm:$0xff] %v5303_v18  ;;  %v5309_v3 = vsel %vm5725_vm0, %v1952_v22, -inf  ;;  %2024 = vmax.xlane.f32.xlu1 %v5303_v18  ;;  %vm5740_vm0 = vmmov %vm5699_vm1 }
 0x4c0   : > { %3073 = vst [vmem:[%s4403_s23 + $0xf0] sm:$0xff] %v5309_v3  ;;  %2018 = vmax.xlane.f32.xlu0 %v5295_v61 }
 0x4c4   : > { %2022 = vmax.xlane.f32.xlu0 %v5309_v3 }
 0x4d0   : > { %3988 = vrot.lane.b32.xlu1 %v5726_v5, %s4229_s18 }
 0x4da   : > { %3993 = vrot.lane.b32.xlu0 %v4669_v12, %s4229_s18 }
 0x530   : > { %v1997_v30 = vpop.xlane.xlu1 %1996 }
 0x531   : > { %v2027_v15 = vsub.f32 %v5206_v37, %v1997_v30  ;;  %v1995_v17 = vpop.xlane.xlu0 %1994 }
 0x532   : > { %v2026_v38 = vsub.f32 %v5212_v56, %v1995_v17 }
 0x533   : > { %v2044_v1 = vmul.f32 1.442695, %v2027_v15 }
 0x534   : > { %v2042_v42 = vmul.f32 1.442695, %v2026_v38 }
 0x535   : > { %4066 = vpow2.f32 %v2044_v1  ;;  %v2001_v24 = vpop.xlane.xlu0 %2000 }
 0x536   : > { %4068 = vpow2.f32 %v2042_v42  ;;  %v2029_v48 = vsub.f32 %v5220_v33, %v2001_v24 }
 0x538   : > { %v2048_v16 = vmul.f32 1.442695, %v2029_v48  ;;  %v2005_v49 = vpop.xlane.xlu1 %2004 }
 0x539   : > { %v2031_v47 = vsub.f32 %v5233_v51, %v2005_v49  ;;  %v1999_v19 = vpop.xlane.xlu0 %1998 }
 0x53a   : > { %4070 = vpow2.f32 %v2048_v16  ;;  %v2028_v12 = vsub.f32 %v5226_v35, %v1999_v19 }
 0x53b   : > { %v2052_v2 = vmul.f32 1.442695, %v2031_v47 }
 0x53c   : > { %v2046_v20 = vmul.f32 1.442695, %v2028_v12  ;;  %v2009_v37 = vpop.xlane.xlu1 %2008 }
 0x53d   : > { %v2003_v0 = vpop.xlane.xlu0 %2002  ;;  %v2033_v56 = vsub.f32 %v5247_v63, %v2009_v37 }
 0x53e   : > { %4072 = vpow2.f32 %v2046_v20  ;;  %v2030_v8 = vsub.f32 %v5239_v44, %v2003_v0 }
 0x53f   : > { %v5327_v62 = vpop.eup %4066  ;;  %4074 = vpow2.f32 %v2052_v2  ;;  %v2056_v35 = vmul.f32 1.442695, %v2033_v56 }
 0x540   : > { %v5329_v33 = vpop.eup %4068  ;;  %v2050_v45 = vmul.f32 1.442695, %v2030_v8  ;;  %v2013_v23 = vpop.xlane.xlu1 %2012  ;;  %2076 = vadd.xlane.f32.xlu0 %v5327_v62 }
 0x541   : > { %v2007_v51 = vpop.xlane.xlu0 %2006  ;;  %2074 = vadd.xlane.f32.xlu1 %v5329_v33  ;;  %v2035_v54 = vsub.f32 %v5261_v25, %v2013_v23 }
 0x542   : > { %4076 = vpow2.f32 %v2050_v45  ;;  %v2032_v9 = vsub.f32 %v5253_v31, %v2007_v51 }
 0x543   : > { %4078 = vpow2.f32 %v2056_v35  ;;  %v2060_v31 = vmul.f32 1.442695, %v2035_v54 }
 0x544   : > { %v5334_v32 = vpop.eup %4070  ;;  %v2017_v63 = vpop.xlane.xlu1 %2016  ;;  %v2054_v44 = vmul.f32 1.442695, %v2032_v9 }
 0x545   : > { %v2011_v50 = vpop.xlane.xlu0 %2010  ;;  %2080 = vadd.xlane.f32.xlu1 %v5334_v32  ;;  %v2037_v27 = vsub.f32 %v5275_v29, %v2017_v63 }
 0x546   : > { %v2034_v26 = vsub.f32 %v5267_v59, %v2011_v50  ;;  %4080 = vpow2.f32 %v2054_v44 }
 0x547   : > { %v2064_v17 = vmul.f32 1.442695, %v2037_v27 }
 0x548   : > { %v5339_v36 = vpop.eup %4072  ;;  %v2058_v6 = vmul.f32 1.442695, %v2034_v26  ;;  %v5341_v10 = vpop.xlane.xlu1 %2020 }
 0x549   : > { %v2015_v22 = vpop.xlane.xlu0 %2014  ;;  %2078 = vadd.xlane.f32.xlu1 %v5339_v36  ;;  %v5345_v5 = vpop.eup %4074  ;;  %v2039_v9 = vsub.f32 %v5289_v58, %v5341_v10 }
 0x54a   : > { %4082 = vpow2.f32 %v2058_v6  ;;  %v2036_v59 = vsub.f32 %v5281_v53, %v2015_v22 }
 0x54b   : > { %4084 = vpow2.f32 %v2060_v31  ;;  %v2068_v63 = vmul.f32 1.442695, %v2039_v9 }
 0x54c   : > { %v5347_v30 = vpop.eup %4076  ;;  %v2025_v25 = vpop.xlane.xlu1 %2024  ;;  %v2062_v42 = vmul.f32 1.442695, %v2036_v59  ;;  %4086 = vpow2.f32 %v2064_v17 }
 0x54d   : > { %v2019_v15 = vpop.xlane.xlu0 %2018  ;;  %2084 = vadd.xlane.f32.xlu1 %v5345_v5  ;;  %2082 = vadd.xlane.f32.xlu0 %v5347_v30  ;;  %v5352_v38 = vpop.eup %4078  ;;  %v2041_v56 = vsub.f32 %v5303_v18, %v2025_v25 }
 0x54e   : > { %v2038_v16 = vsub.f32 %v5295_v61, %v2019_v15  ;;  %4088 = vpow2.f32 %v2062_v42 }
 0x54f   : > { %v2072_v45 = vmul.f32 1.442695, %v2041_v56 }
 0x550   : > { %v3989_v1 = vpop.permute.xlu1 %3988  ;;  %v5356_v53 = vpop.eup %4080  ;;  %v2066_v12 = vmul.f32 1.442695, %v2038_v16 }
 0x551   : > { %v3991_v29 = vunpack.i.h.bf16 %v3989_v1  ;;  %v3990_v24 = vunpack.i.l.bf16 %v3989_v1  ;;  %2088 = vadd.xlane.f32.xlu1 %v5352_v38  ;;  %v2023_v48 = vpop.xlane.xlu0 %2022 }
 0x552   : > { %v2040_v20 = vsub.f32 %v5309_v3, %v2023_v48  ;;  %4090 = vpow2.f32 %v2066_v12 }
 0x553   : > { %v3773_v49 = vpack.c.bf16 %v3991_v29, %v3990_v24 }
 0x554   : > { %v5358_v47 = vpop.eup %4082  ;;  %v2070_v8 = vmul.f32 1.442695, %v2040_v20 }
 0x555   : > { %2086 = vadd.xlane.f32.xlu1 %v5356_v53  ;;  %3774 = vmatprep.subr.bf16.mxu0 %v3773_v49  ;;  %v3994_v19 = vpop.permute.xlu0 %3993  ;;  %v5363_v61 = vpop.eup %4084 }
 0x556   : > { %3794 = vmatprep.subr.bf16.mxu1 %v3773_v49  ;;  %2090 = vadd.xlane.f32.xlu0 %v5358_v47  ;;  %v3996_v37 = vunpack.i.h.bf16 %v3994_v19  ;;  %v3995_v2 = vunpack.i.l.bf16 %v3994_v19  ;;  %v5367_v3 = vpop.eup %4086  ;;  %4092 = vpow2.f32 %v2070_v8 }
 0x557   : > { %3776 = vmatpush3.bf16.msra.mxu0 %v3773_v49  ;;  %3802 = vmatpush3.bf16.msra.mxu1 %v3773_v49  ;;  %4094 = vpow2.f32 %v2072_v45 }
 0x558   : > { %v3777_v0 = vpack.c.bf16 %v3996_v37, %v3995_v2  ;;  %v5370_v23 = vpop.eup %4088  ;;  %4096 = vpow2.f32 %v2068_v63 }
 0x559   : > { %2092 = vadd.xlane.f32.xlu1 %v5363_v61 }
 0x55a   : > { %3778 = vmatprep.subr.bf16.mxu0 %v3777_v0  ;;  %3795 = vmatprep.subr.bf16.mxu1 %v3777_v0 }
 0x55b   : > { %3780 = vmatpush3.bf16.msra.mxu0 %v3777_v0  ;;  %3803 = vmatpush3.bf16.msra.mxu1 %v3777_v0 }
 0x55c   : > { %v5373_v51 = vpop.eup %4090 }
 0x55d   : > { %2096 = vadd.xlane.f32.xlu1 %v5367_v3 }
 0x560   : > { %v5376_v18 = vpop.eup %4092 }
 0x561   : > { %2094 = vadd.xlane.f32.xlu1 %v5370_v23  ;;  %v5379_v35 = vpop.eup %4094 }
 0x562   : > { %v5386_v44 = vpop.eup %4096 }
 0x565   : > { %2098 = vadd.xlane.f32.xlu1 %v5373_v51 }
 0x569   : > { %2102 = vadd.xlane.f32.xlu1 %v5376_v18 }
 0x56c   : > { %3998 = vrot.lane.b32.xlu0 %v4685_v21, %s4229_s18 }
 0x56d   : > { %2104 = vadd.xlane.f32.xlu1 %v5379_v35 }
 0x58b   : > { %2100 = vadd.xlane.f32.xlu0 %v5386_v44 }
 0x5cd   : > { %v2077_v21 = vpop.xlane.xlu0 %2076 }
 0x5ce   : > { %v2075_v50 = vpop.xlane.xlu1 %2074 }
 0x5cf   : > { %4098 = vrcp.f32 %v2075_v50 }
 0x5d0   : > { %4100 = vrcp.f32 %v2077_v21 }
 0x5d2   : > { %v2081_v54 = vpop.xlane.xlu1 %2080 }
 0x5d6   : > { %v2079_v26 = vpop.xlane.xlu1 %2078 }
 0x5d7   : > { %4102 = vrcp.f32 %v2079_v26 }
 0x5d9   : > { %v4099_v6 = vpop.eup %4098 }
 0x5da   : > { %v2085_v22 = vpop.xlane.xlu1 %2084  ;;  %v2122_v31 = vmul.f32 %v4099_v6, %v5329_v33  ;;  %v2083_v25 = vpop.xlane.xlu0 %2082 }
 0x5db   : > { %v4101_v29 = vpop.eup %4100 }
 0x5dc   : > { %3557 = vmatprep.mubr.f32.mxu0 %v2122_v31  ;;  %v2123_v16 = vmul.f32 %v4101_v29, %v5327_v62 }
 0x5de   : > { %v2089_v27 = vpop.xlane.xlu1 %2088 }
 0x5e1   : > { %v4103_v24 = vpop.eup %4102 }
 0x5e2   : > { %v2087_v58 = vpop.xlane.xlu1 %2086  ;;  %v2124_v12 = vmul.f32 %v4103_v24, %v5339_v36 }
 0x5e3   : > { %v2091_v10 = vpop.xlane.xlu0 %2090 }
 0x5e4   : > { %4104 = vrcp.f32 %v2091_v10 }
 0x5e5   : > { %4106 = vrcp.f32 %v2081_v54 }
 0x5e6   : > { %4108 = vrcp.f32 %v2083_v25  ;;  %v2093_v59 = vpop.xlane.xlu1 %2092  ;;  %v2428_v25 = vld [vmem:[%s4396_s14 + $0x8] sm:$0xff] }
 0x5e7   : > { %4110 = vrcp.f32 %v2093_v59  ;;  %v3999_v15 = vpop.permute.xlu0 %3998 }
 0x5e8   : > { %v4001_v17 = vunpack.i.h.bf16 %v3999_v15  ;;  %v4000_v1 = vunpack.i.l.bf16 %v3999_v15  ;;  %4112 = vrcp.f32 %v2085_v22 }
 0x5e9   : > { %4114 = vrcp.f32 %v2087_v58 }
 0x5ea   : > { %v3781_v42 = vpack.c.bf16 %v4001_v17, %v4000_v1  ;;  %v2097_v33 = vpop.xlane.xlu1 %2096  ;;  %4116 = vrcp.f32 %v2089_v27  ;;  %v2427_v27 = vld [vmem:[%s4396_s14] sm:$0xff] }
 0x5eb   : > { %4118 = vrcp.f32 %v2097_v33  ;;  %v3785_v58 = vpack.c.bf16 %v2428_v25, %v2427_v27  ;;  %v2415_v27 = vld [vmem:[#allocation2 + $0x20] sm:$0xff] }
 0x5ec   : > { %3782 = vmatprep.subr.bf16.mxu0 %v3781_v42  ;;  %3796 = vmatprep.subr.bf16.mxu1 %v3781_v42 }
 0x5ed   : > { %3784 = vmatpush3.bf16.msra.mxu0 %v3781_v42  ;;  %3804 = vmatpush3.bf16.msra.mxu1 %v3781_v42 }
 0x5ee   : > { %v4105_v48 = vpop.eup %4104  ;;  %v2095_v49 = vpop.xlane.xlu1 %2094  ;;  %3786 = vmatprep.subr.bf16.mxu0 %v3785_v58 }
 0x5ef   : > { %v4107_v19 = vpop.eup %4106  ;;  %4120 = vrcp.f32 %v2095_v49  ;;  %v2130_v20 = vmul.f32 %v4105_v48, %v5358_v47 }
 0x5f0   : > { %v4109_v37 = vpop.eup %4108  ;;  %3558 = vmatmul.mubr.f32.vlgmr.msra.gmra.mrb[32].mxu0 %v2123_v16  ;;  %v2125_v8 = vmul.f32 %v4107_v19, %v5334_v32 }
 0x5f1   : > { %v4111_v2 = vpop.eup %4110  ;;  %3560 = vmatprep.mubr.f32.mxu0 %v2124_v12  ;;  %3569 = vmatprep.mubr.f32.mxu1 %v2130_v20  ;;  %v2126_v62 = vmul.f32 %v4109_v37, %v5347_v30 }
 0x5f2   : > { %v2131_v0 = vmul.f32 %v4111_v2, %v5363_v61  ;;  %v2099_v56 = vpop.xlane.xlu1 %2098  ;;  %v4113_v45 = vpop.eup %4112  ;;  %3788 = vmatpush3.bf16.msra.mxu0 %v3785_v58 }
 0x5f3   : > { %4122 = vrcp.f32 %v2099_v56  ;;  %v4115_v9 = vpop.eup %4114  ;;  %v2127_v36 = vmul.f32 %v4113_v45, %v5345_v5 }
 0x5f4   : > { %3561 = vmatmul.mubr.f32.gmra.mrb[34].mxu0 %v2125_v8  ;;  %3570 = vmatmul.mubr.f32.vlgmr.msra.gmra.mrb[48].mxu1 %v2131_v0  ;;  %v4117_v47 = vpop.eup %4116  ;;  %v2128_v63 = vmul.f32 %v4115_v9, %v5356_v53 }
 0x5f5   : > { %3563 = vmatprep.mubr.f32.mxu0 %v2126_v62  ;;  %v4119_v50 = vpop.eup %4118  ;;  %v2129_v61 = vmul.f32 %v4117_v47, %v5352_v38 }
 0x5f6   : > { %v2133_v26 = vmul.f32 %v4119_v50, %v5367_v3  ;;  %v2103_v5 = vpop.xlane.xlu1 %2102 }
 0x5f7   : > { %4124 = vrcp.f32 %v2103_v5  ;;  %v2411_v5 = vld [vmem:[#allocation2] sm:$0xff] }
 0x5f8   : > { %3564 = vmatmul.mubr.f32.gmra.mrb[36].mxu0 %v2127_v36 }
 0x5f9   : > { %v4121_v54 = vpop.eup %4120  ;;  %3566 = vmatprep.mubr.f32.mxu0 %v2128_v63 }
 0x5fa   : > { %v2132_v32 = vmul.f32 %v4121_v54, %v5370_v23  ;;  %v2105_v53 = vpop.xlane.xlu1 %2104 }
 0x5fc   : > { %3567 = vmatmul.mubr.f32.gmra.mrb[38].mxu0 %v2129_v61  ;;  %3572 = vmatprep.mubr.f32.mxu1 %v2132_v32 }
 0x5fd   : > { %v4123_v30 = vpop.eup %4122  ;;  %3573 = vmatmul.mubr.f32.gmra.mrb[50].mxu1 %v2133_v26 }
 0x5fe   : > { %v2134_v6 = vmul.f32 %v4123_v30, %v5373_v51 }
 0x600   : > { %3575 = vmatprep.mubr.f32.mxu1 %v2134_v6 }
 0x601   : > { %v4125_v38 = vpop.eup %4124 }
 0x602   : > { %v2136_v21 = vmul.f32 %v4125_v38, %v5376_v18 }
 0x618   : > { %v2101_v22 = vpop.xlane.xlu0 %2100 }
 0x619   : > { %4126 = vrcp.f32 %v2101_v22 }
 0x61a   : > { %4128 = vrcp.f32 %v2105_v53 }
 0x623   : > { %v4127_v31 = vpop.eup %4126 }
 0x624   : > { %v2135_v23 = vmul.f32 %v4127_v31, %v5386_v44  ;;  %v4129_v3 = vpop.eup %4128  ;;  %v2414_v31 = vld [vmem:[#allocation2 + $0x18] sm:$0xff] }
 0x625   : > { %v2137_v51 = vmul.f32 %v4129_v3, %v5379_v35 }
 0x626   : > { %3576 = vmatmul.mubr.f32.gmra.mrb[52].mxu1 %v2135_v23  ;;  %v2413_v23 = vld [vmem:[#allocation2 + $0x10] sm:$0xff] }
 0x627   : > { %3578 = vmatprep.mubr.f32.mxu1 %v2136_v21 }
 0x62a   : > { %3579 = vmatmul.mubr.f32.gmra.mrb[54].mxu1 %v2137_v51  ;;  %v2416_v51 = vld [vmem:[#allocation2 + $0x28] sm:$0xff] }
 0x6c3   : > { %v3559_v10 = vpop.f32.mrb[32].mxu0 }
 0x6c4   : > { %2349 = vrot.lane.b32.xlu1 %v3559_v10, %s4230_s21  ;;  %v2252_v59 = vpop.f32.mrb[33].mxu0 }
 0x6c7   : > { %v3562_v15 = vpop.f32.mrb[34].mxu0  ;;  %v3571_v44 = vpop.f32.mrb[48].mxu1 }
 0x6c8   : > { %2347 = vrot.lane.b32.xlu1 %v2252_v59, %s4230_s21  ;;  %v2262_v18 = vpop.f32.mrb[35].mxu0  ;;  %v2292_v17 = vpop.f32.mrb[49].mxu1 }
 0x6c9   : > { %2351 = vrot.lane.b32.xlu0 %v2262_v18, %s4230_s21 }
 0x6cb   : > { %v3565_v35 = vpop.f32.mrb[36].mxu0 }
 0x6cc   : > { %2353 = vrot.lane.b32.xlu1 %v3562_v15, %s4230_s21  ;;  %v2272_v1 = vpop.f32.mrb[37].mxu0  ;;  %v2418_v15 = vld [vmem:[#allocation2 + $0x38] sm:$0xff] }
 0x6cd   : > { %2365 = vrot.lane.b32.xlu0 %v3571_v44, %s4230_s21  ;;  %v2417_v44 = vld [vmem:[#allocation2 + $0x30] sm:$0xff] }
 0x6cf   : > { %v3568_v42 = vpop.f32.mrb[38].mxu0 }
 0x6d0   : > { %2357 = vrot.lane.b32.xlu1 %v3565_v35, %s4230_s21  ;;  %v2282_v33 = vpop.f32.mrb[39].mxu0  ;;  %v3574_v29 = vpop.f32.mrb[50].mxu1 }
 0x6d1   : > { %v2302_v24 = vpop.f32.mrb[51].mxu1  ;;  %2369 = vrot.lane.b32.xlu0 %v3574_v29, %s4230_s21 }
 0x6d4   : > { %2355 = vrot.lane.b32.xlu1 %v2272_v1, %s4230_s21 }
 0x6d8   : > { %2361 = vrot.lane.b32.xlu1 %v3568_v42, %s4230_s21  ;;  %v2420_v42 = vld [vmem:[#allocation2 + $0x48] sm:$0xff] }
 0x6dc   : > { %2359 = vrot.lane.b32.xlu1 %v2282_v33, %s4230_s21  ;;  %v2419_v33 = vld [vmem:[#allocation2 + $0x40] sm:$0xff] }
 0x6e0   : > { %2363 = vrot.lane.b32.xlu1 %v2292_v17, %s4230_s21 }
 0x6e4   : > { %2367 = vrot.lane.b32.xlu1 %v2302_v24, %s4230_s21 }
 0x6f9   : > { %v3577_v48 = vpop.f32.mrb[52].mxu1 }
 0x6fa   : > { %v2312_v16 = vpop.f32.mrb[53].mxu1  ;;  %2373 = vrot.lane.b32.xlu0 %v3577_v48, %s4230_s21 }
 0x6fb   : > { %2371 = vrot.lane.b32.xlu1 %v2312_v16, %s4230_s21 }
 0x6fd   : > { %v3580_v49 = vpop.f32.mrb[54].mxu1 }
 0x6fe   : > { %v2322_v19 = vpop.f32.mrb[55].mxu1  ;;  %2377 = vrot.lane.b32.xlu0 %v3580_v49, %s4230_s21  ;;  %v2422_v49 = vld [vmem:[#allocation2 + $0x58] sm:$0xff] }
 0x6ff   : > { %2375 = vrot.lane.b32.xlu1 %v2322_v19, %s4230_s21  ;;  %v2421_v19 = vld [vmem:[#allocation2 + $0x50] sm:$0xff] }
 0x736   : > { %v2350_v12 = vpop.permute.xlu1 %2349 }
 0x737   : > { %v2396_v0 = vsel %vm5728_vm14, %v5172_v28, %v2350_v12  ;;  %vm5742_vm14 = vcmask 261120  }
 0x73a   : > { %v2348_v20 = vpop.permute.xlu1 %2347 }
 0x73b   : > { %v2395_v37 = vsel %vm5727_vm10, %v5174_v34, %v2348_v20  ;;  %v2352_v2 = vpop.permute.xlu0 %2351  ;;  %vm5741_vm10 = vmmov %vm5740_vm0 }
 0x73c   : > { %v2397_v56 = vsel %vm5729_vm13, %v5178_v41, %v2352_v2  ;;  %3585 = vmatprep.mubr.msk.f32.mxu0 %vm2429_vm9, %v2395_v37  ;;  %vm5743_vm13 = vmmov %vm5742_vm14 }
 0x73d   : > { %3586 = vmatmul.mubr.msk.f32.vlgmr.msra.gmra.mrb[40].mxu0 %vm2429_vm9, %v2396_v0  ;;  %v2424_v0 = vld [vmem:[#allocation2 + $0x68] sm:$0xff] }
 0x73e   : > { %v2354_v8 = vpop.permute.xlu1 %2353  ;;  %3588 = vmatprep.mubr.msk.f32.mxu0 %vm2429_vm9, %v2397_v56  ;;  %v2423_v56 = vld [vmem:[#allocation2 + $0x60] sm:$0xff] }
 0x73f   : > { %v2398_v45 = vsel %vm5730_vm6, %v5176_v40, %v2354_v8  ;;  %v2366_v47 = vpop.permute.xlu0 %2365  ;;  %vm5744_vm6 = vmmov %vm5743_vm13 }
 0x740   : > { %v2404_v50 = vsel %vm5735_vm7, %v5188_v55, %v2366_v47 }
 0x741   : > { %3589 = vmatmul.mubr.msk.f32.gmra.mrb[42].mxu0 %vm2429_vm9, %v2398_v45 }
 0x742   : > { %v2358_v34 = vpop.permute.xlu1 %2357 }
 0x743   : > { %v2400_v41 = vsel %vm5732_vm2, %v5180_v46, %v2358_v34  ;;  %v2370_v54 = vpop.permute.xlu0 %2369 }
 0x744   : > { %v2406_v61 = vsel %vm5737_vm11, %v5192_v60, %v2370_v54 }
 0x746   : > { %v2356_v62 = vpop.permute.xlu1 %2355 }
 0x747   : > { %v2399_v28 = vsel %vm5731_vm4, %v5182_v57, %v2356_v62  ;;  %vm5745_vm4 = vmmov %vm5744_vm6 }
 0x748   : > { %3591 = vmatprep.mubr.msk.f32.mxu0 %vm2429_vm9, %v2399_v28  ;;  %vm5747_vm2 = vmmov %vm5745_vm4  ;;  %v2426_v28 = vld [vmem:[#allocation2 + $0x78] sm:$0xff] }
 0x749   : > { %3592 = vmatmul.mubr.msk.f32.gmra.mrb[44].mxu0 %vm2429_vm9, %v2400_v41  ;;  %v2425_v41 = vld [vmem:[#allocation2 + $0x70] sm:$0xff] }
 0x74a   : > { %v2362_v9 = vpop.permute.xlu1 %2361 }
 0x74b   : > { %v2402_v63 = vsel %vm5734_vm5, %v5184_v52, %v2362_v9  ;;  %vm5749_vm5 = vmmov %vm5747_vm2 }
 0x74e   : > { %v2360_v36 = vpop.permute.xlu1 %2359 }
 0x74f   : > { %v2401_v40 = vsel %vm5733_vm3, %v5186_v13, %v2360_v36  ;;  %vm5748_vm3 = vmmov %vm5747_vm2 }
 0x750   : > { %3594 = vmatprep.mubr.msk.f32.mxu0 %vm2429_vm9, %v2401_v40 }
 0x751   : > { %3595 = vmatmul.mubr.msk.f32.gmra.mrb[46].mxu0 %vm2429_vm9, %v2402_v63 }
 0x752   : > { %v2364_v57 = vpop.permute.xlu1 %2363 }
 0x753   : > { %v2403_v46 = vsel %vm5699_vm1, %v5190_v39, %v2364_v57  ;;  %vm5750_vm1 = vmmov %vm5747_vm2  ;;  %v3092_v57 = vld [vmem:[%s5595_s7] ss:$0 sm:$0xff] (!%p3091_p1) }
 0x754   : > { %3597 = vmatprep.mubr.msk.f32.mxu0 %vm2429_vm9, %v2403_v46  ;;  %vm5751_vm7 = vmmov %vm5750_vm1 }
 0x755   : > { %3598 = vmatmul.mubr.msk.f32.gmra.mrb[48].mxu0 %vm2429_vm9, %v2404_v50  ;;  %vm5753_vm11 = vmmov %vm5750_vm1 }
 0x756   : > { %v2368_v13 = vpop.permute.xlu1 %2367 }
 0x757   : > { %v2405_v52 = vsel %vm5736_vm8, %v5194_v11, %v2368_v13  ;;  %vm5752_vm8 = vmmov %vm5750_vm1 }
 0x758   : > { %3600 = vmatprep.mubr.msk.f32.mxu0 %vm2429_vm9, %v2405_v52 }
 0x759   : > { %3601 = vmatmul.mubr.msk.f32.gmra.mrb[50].mxu0 %vm2429_vm9, %v2406_v61 }
 0x76c   : > { %v2374_v39 = vpop.permute.xlu0 %2373 }
 0x76d   : > { %v2372_v32 = vpop.permute.xlu1 %2371  ;;  %v2408_v26 = vsel %vm5739_vm15, %v5196_v4, %v2374_v39  ;;  %vm5755_vm15 = vmmov %vm5750_vm1 }
 0x76e   : > { %v2407_v55 = vsel %vm5738_vm12, %v5198_v43, %v2372_v32  ;;  %v2412_v43 = vld [vmem:[#allocation2 + $0x8] sm:$0xff]  ;;  %vm5754_vm12 = vmmov %vm5750_vm1 }
 0x76f   : > { %3603 = vmatprep.mubr.msk.f32.mxu0 %vm2429_vm9, %v2407_v55 }
 0x770   : > { %v2378_v30 = vpop.permute.xlu0 %2377  ;;  %3604 = vmatmul.mubr.msk.f32.gmra.mrb[52].mxu0 %vm2429_vm9, %v2408_v26 }
 0x771   : > { %v2376_v11 = vpop.permute.xlu1 %2375  ;;  %v2410_v6 = vsel %vm5741_vm10, %v5200_v7, %v2378_v30 }
 0x772   : > { %v2409_v60 = vsel %vm5740_vm0, %v5202_v14, %v2376_v11  ;;  %vm5756_vm0 = vmmov %vm5750_vm1 }
 0x773   : > { %3606 = vmatprep.mubr.msk.f32.mxu0 %vm2429_vm9, %v2409_v60  ;;  %vm5757_vm10 = vmmov %vm5756_vm0 }
 0x774   : > { %3607 = vmatmul.mubr.msk.f32.gmra.mrb[54].mxu0 %vm2429_vm9, %v2410_v6  ;;  %vm5746_vm9 = vmmov %vm5745_vm4 }
 0x810   : > { %v3587_v53 = vpop.f32.mrb[40].mxu0 }
 0x811   : > { %v2624_v4 = vadd.f32 %v3587_v53, %v2412_v43  ;;  %v2544_v22 = vpop.f32.mrb[41].mxu0 }
 0x812   : > { %v2623_v38 = vadd.f32 %v2544_v22, %v2411_v5 }
 0x813   : > { %2640 = vst.msk [vmem:[#allocation2 + $0x8] sm:$0xff] %vm5742_vm14, %v2624_v4  ;;  %vm5758_vm14 = vcmask (!%p3091_p1), 261120  }
 0x814   : > { %2639 = vst.msk [vmem:[#allocation2] sm:$0xff] %vm5743_vm13, %v2623_v38  ;;  %v3590_v14 = vpop.f32.mrb[42].mxu0  ;;  %vm5759_vm13 = vmmov (!%p3091_p1), %vm5758_vm14 }
 0x815   : > { %v2626_v3 = vadd.f32 %v3590_v14, %v2414_v31  ;;  %v2554_v21 = vpop.f32.mrb[43].mxu0 }
 0x816   : > { %v2625_v7 = vadd.f32 %v2554_v21, %v2413_v23 }
 0x817   : > { %2642 = vst.msk [vmem:[#allocation2 + $0x18] sm:$0xff] %vm5744_vm6, %v2626_v3  ;;  %vm5760_vm6 = vmmov (!%p3091_p1), %vm5759_vm13 }
 0x818   : > { %2641 = vst.msk [vmem:[#allocation2 + $0x10] sm:$0xff] %vm5745_vm4, %v2625_v7  ;;  %vm5761_vm4 = vmmov (!%p3091_p1), %vm5760_vm6 }
 0x81a   : > { %v2660_v46 = vld [vmem:[#allocation2 + $0x8] sm:$0xff] (!%p3091_p1) }
 0x81b   : > { %v2659_v63 = vld [vmem:[#allocation2] sm:$0xff] (!%p3091_p1)  ;;  %v2683_v54 = vadd.f32 (!%p3091_p1), %v3092_v57, %v2660_v46 }
 0x81c   : > { %v3593_v25 = vpop.f32.mrb[44].mxu0  ;;  %v2682_v50 = vadd.f32 (!%p3091_p1), %v3092_v57, %v2659_v63 }
 0x81d   : > { %v2628_v58 = vadd.f32 %v3593_v25, %v2416_v51  ;;  %v2564_v10 = vpop.f32.mrb[45].mxu0  ;;  %2699 = vst.msk [vmem:[%s4401_s30 + $0x8] sm:$0xff] (!%p3091_p1), %vm5759_vm13, %v2683_v54 }
 0x81e   : > { %v2627_v59 = vadd.f32 %v2564_v10, %v2415_v27  ;;  %v2662_v52 = vld [vmem:[#allocation2 + $0x18] sm:$0xff] (!%p3091_p1)  ;;  %2698 = vst.msk [vmem:[%s4401_s30] sm:$0xff] (!%p3091_p1), %vm5758_vm14, %v2682_v50 }
 0x81f   : > { %2644 = vst.msk [vmem:[#allocation2 + $0x28] sm:$0xff] %vm5746_vm9, %v2628_v58  ;;  %v2661_v13 = vld [vmem:[#allocation2 + $0x10] sm:$0xff] (!%p3091_p1)  ;;  %v2685_v32 = vadd.f32 (!%p3091_p1), %v3092_v57, %v2662_v52  ;;  %vm5762_vm9 = vmmov (!%p3091_p1), %vm5761_vm4 }
 0x820   : > { %2643 = vst.msk [vmem:[#allocation2 + $0x20] sm:$0xff] %vm5747_vm2, %v2627_v59  ;;  %v2684_v39 = vadd.f32 (!%p3091_p1), %v3092_v57, %v2661_v13  ;;  %vm5763_vm2 = vmmov (!%p3091_p1), %vm5761_vm4 }
 0x821   : > { %2701 = vst.msk [vmem:[%s4401_s30 + $0x18] sm:$0xff] (!%p3091_p1), %vm5761_vm4, %v2685_v32 }
 0x822   : > { %2700 = vst.msk [vmem:[%s4401_s30 + $0x10] sm:$0xff] (!%p3091_p1), %vm5760_vm6, %v2684_v39 }
 0x824   : > { %v3596_v18 = vpop.f32.mrb[46].mxu0 }
 0x825   : > { %v2630_v17 = vadd.f32 %v3596_v18, %v2418_v15  ;;  %v2574_v35 = vpop.f32.mrb[47].mxu0 }
 0x826   : > { %v2629_v1 = vadd.f32 %v2574_v35, %v2417_v44  ;;  %v2664_v26 = vld [vmem:[#allocation2 + $0x28] sm:$0xff] (!%p3091_p1) }
 0x827   : > { %2646 = vst.msk [vmem:[#allocation2 + $0x38] sm:$0xff] %vm5748_vm3, %v2630_v17  ;;  %v2663_v61 = vld [vmem:[#allocation2 + $0x20] sm:$0xff] (!%p3091_p1)  ;;  %v2687_v60 = vadd.f32 (!%p3091_p1), %v3092_v57, %v2664_v26  ;;  %vm5764_vm3 = vmmov (!%p3091_p1), %vm5763_vm2 }
 0x828   : > { %2645 = vst.msk [vmem:[#allocation2 + $0x30] sm:$0xff] %vm5749_vm5, %v2629_v1  ;;  %v3599_v29 = vpop.f32.mrb[48].mxu0  ;;  %v2686_v55 = vadd.f32 (!%p3091_p1), %v3092_v57, %v2663_v61  ;;  %vm5765_vm5 = vmmov (!%p3091_p1), %vm5763_vm2 }
 0x829   : > { %v2632_v24 = vadd.f32 %v3599_v29, %v2420_v42  ;;  %v2584_v48 = vpop.f32.mrb[49].mxu0  ;;  %2703 = vst.msk [vmem:[%s4401_s30 + $0x28] sm:$0xff] (!%p3091_p1), %vm5763_vm2, %v2687_v60 }
 0x82a   : > { %v2631_v16 = vadd.f32 %v2584_v48, %v2419_v33  ;;  %2702 = vst.msk [vmem:[%s4401_s30 + $0x20] sm:$0xff] (!%p3091_p1), %vm5762_vm9, %v2686_v55 }
 0x82b   : > { %2648 = vst.msk [vmem:[#allocation2 + $0x48] sm:$0xff] %vm5750_vm1, %v2632_v24  ;;  %vm5766_vm1 = vmmov (!%p3091_p1), %vm5763_vm2 }
 0x82c   : > { %2647 = vst.msk [vmem:[#allocation2 + $0x40] sm:$0xff] %vm5751_vm7, %v2631_v16  ;;  %v3602_v12 = vpop.f32.mrb[50].mxu0  ;;  %vm5767_vm7 = vmmov (!%p3091_p1), %vm5766_vm1 }
 0x82d   : > { %v2634_v20 = vadd.f32 %v3602_v12, %v2422_v49  ;;  %v2594_v37 = vpop.f32.mrb[51].mxu0 }
 0x82e   : > { %v2633_v2 = vadd.f32 %v2594_v37, %v2421_v19  ;;  %v2666_v11 = vld [vmem:[#allocation2 + $0x38] sm:$0xff] (!%p3091_p1) }
 0x82f   : > { %2650 = vst.msk [vmem:[#allocation2 + $0x58] sm:$0xff] %vm5752_vm8, %v2634_v20  ;;  %v2665_v30 = vld [vmem:[#allocation2 + $0x30] sm:$0xff] (!%p3091_p1)  ;;  %v2689_v43 = vadd.f32 (!%p3091_p1), %v3092_v57, %v2666_v11  ;;  %vm5768_vm8 = vmmov (!%p3091_p1), %vm5766_vm1 }
 0x830   : > { %2649 = vst.msk [vmem:[#allocation2 + $0x50] sm:$0xff] %vm5753_vm11, %v2633_v2  ;;  %v2688_v6 = vadd.f32 (!%p3091_p1), %v3092_v57, %v2665_v30  ;;  %vm5769_vm11 = vmmov (!%p3091_p1), %vm5766_vm1 }
 0x831   : > { %2705 = vst.msk [vmem:[%s4401_s30 + $0x38] sm:$0xff] (!%p3091_p1), %vm5765_vm5, %v2689_v43 }
 0x832   : > { %v2668_v53 = vld [vmem:[#allocation2 + $0x48] sm:$0xff] (!%p3091_p1)  ;;  %2704 = vst.msk [vmem:[%s4401_s30 + $0x30] sm:$0xff] (!%p3091_p1), %vm5764_vm3, %v2688_v6 }
 0x833   : > { %v2667_v5 = vld [vmem:[#allocation2 + $0x40] sm:$0xff] (!%p3091_p1)  ;;  %v2691_v38 = vadd.f32 (!%p3091_p1), %v3092_v57, %v2668_v53 }
 0x834   : > { %v2690_v22 = vadd.f32 (!%p3091_p1), %v3092_v57, %v2667_v5 }
 0x835   : > { %2707 = vst.msk [vmem:[%s4401_s30 + $0x48] sm:$0xff] (!%p3091_p1), %vm5767_vm7, %v2691_v38 }
 0x836   : > { %v2670_v23 = vld [vmem:[#allocation2 + $0x58] sm:$0xff] (!%p3091_p1)  ;;  %2706 = vst.msk [vmem:[%s4401_s30 + $0x40] sm:$0xff] (!%p3091_p1), %vm5766_vm1, %v2690_v22 }
 0x837   : > { %v2669_v4 = vld [vmem:[#allocation2 + $0x50] sm:$0xff] (!%p3091_p1)  ;;  %v2693_v21 = vadd.f32 (!%p3091_p1), %v3092_v57, %v2670_v23 }
 0x838   : > { %v2692_v31 = vadd.f32 (!%p3091_p1), %v3092_v57, %v2669_v4 }
 0x839   : > { %2709 = vst.msk [vmem:[%s4401_s30 + $0x58] sm:$0xff] (!%p3091_p1), %vm5769_vm11, %v2693_v21 }
 0x83a   : > { %2708 = vst.msk [vmem:[%s4401_s30 + $0x50] sm:$0xff] (!%p3091_p1), %vm5768_vm8, %v2692_v31 }
 0x843   : > { %v3605_v8 = vpop.f32.mrb[52].mxu0 }
 0x844   : > { %v2636_v45 = vadd.f32 %v3605_v8, %v2424_v0  ;;  %v2604_v34 = vpop.f32.mrb[53].mxu0 }
 0x845   : > { %v2635_v62 = vadd.f32 %v2604_v34, %v2423_v56  ;;  %2658 = sbr.rel (%p3091_p1) target bundleno = 2134 (0x856), region = 64 }
 0x846   : > { %2652 = vst.msk [vmem:[#allocation2 + $0x68] sm:$0xff] %vm5754_vm12, %v2636_v45  ;;  %vm5770_vm12 = vmmov (!%p3091_p1), %vm5766_vm1 }
 0x847   : > { %2651 = vst.msk [vmem:[#allocation2 + $0x60] sm:$0xff] %vm5755_vm15, %v2635_v62  ;;  %v3608_v9 = vpop.f32.mrb[54].mxu0  ;;  %vm5771_vm15 = vmmov (!%p3091_p1), %vm5766_vm1 }
 0x848   : > { %v2638_v36 = vadd.f32 %v3608_v9, %v2426_v28  ;;  %v2614_v47 = vpop.f32.mrb[55].mxu0 }
 0x849   : > { %v2637_v40 = vadd.f32 %v2614_v47, %v2425_v41 }
 0x84a   : > { %2654 = vst.msk [vmem:[#allocation2 + $0x78] sm:$0xff] %vm5756_vm0, %v2638_v36  ;;  %vm5772_vm0 = vmmov (!%p3091_p1), %vm5766_vm1 }
 0x84b   : > { %2653 = vst.msk [vmem:[#allocation2 + $0x70] sm:$0xff] %vm5757_vm10, %v2637_v40  ;;  %vm5773_vm10 = vmmov (!%p3091_p1), %vm5772_vm0 }
 0x84d   : > { %v2672_v3 = vld [vmem:[#allocation2 + $0x68] sm:$0xff] }
 0x84e   : > { %v2671_v14 = vld [vmem:[#allocation2 + $0x60] sm:$0xff]  ;;  %v2695_v51 = vadd.f32 %v3092_v57, %v2672_v3 }
 0x84f   : > { %v2694_v7 = vadd.f32 %v3092_v57, %v2671_v14 }
 0x850   : > { %2711 = vst.msk [vmem:[%s4401_s30 + $0x68] sm:$0xff] %vm5771_vm15, %v2695_v51 }
 0x851   : > { %v2674_v25 = vld [vmem:[#allocation2 + $0x78] sm:$0xff]  ;;  %2710 = vst.msk [vmem:[%s4401_s30 + $0x60] sm:$0xff] %vm5770_vm12, %v2694_v7 }
 0x852   : > { %v2673_v27 = vld [vmem:[#allocation2 + $0x70] sm:$0xff]  ;;  %v2697_v10 = vadd.f32 %v3092_v57, %v2674_v25 }
 0x853   : > { %v2696_v58 = vadd.f32 %v3092_v57, %v2673_v27 }
 0x854   : > { %2713 = vst.msk [vmem:[%s4401_s30 + $0x78] sm:$0xff] %vm5773_vm10, %v2697_v10 }
 0x855   : > { %2712 = vst.msk [vmem:[%s4401_s30 + $0x70] sm:$0xff] %vm5772_vm0, %v2696_v58 }
 0x856 PF: > { %s3106_s25 = sshll.u32 %s4208_s12, 5  ;;  %s3096_s19 = sshll.u32 %s4212_s13, 6 }
 0x857   : > { %s2746_s20 = sshll.u32 %s4403_s23, 4  ;;  %s2743_s14 = sadd.s32 %s3106_s25, %s3096_s19  ;;  %s5526_s20 = int_to_ptr.vmem [resolvable:$true] %s2746_s20 }
 0x858   : > { %s3097_s27 = sshll.u32 %s2743_s14, 7  ;;  %s5775_s9 = sld [smem:[#allocation31_spill]] }
 0x859   : > { %s5776_s11 = sand.u32 1, %s4200_s10   ;;  %s4130_s16 = scalar_lea.vmem %s5526_s20, 4096 }
 0x85a   : > { %s5535_s15 = scalar_lea.sflag [#allocation5], %s5776_s11  ;;  %p4131_p2 = scmp.ne.s32.totalorder %s5526_s20, %s4130_s16 }
 0x85b   : > { %s4231_s12 = smov [#allocation4]  }
 0x85c   : > { %p4132_p4 = pnand %p4131_p2, %p4334_p3  ;;  %s4134_s13 = sshll.u32 %s4231_s12, 4  ;;  %s4135_s13 = int_to_ptr.vmem [resolvable:$false] %s4134_s13 }
 0x85d   : > { %s4136_s23 = scalar_lea.vmem %s4135_s13, 8192  ;;  %p4137_p6 = scmp.lt.s32.totalorder %s5526_s20, %s4135_s13 }
 0x85e   : > { %s5531_s30 = scalar_lea.hbm %s5775_s9, %s3097_s27  ;;  %p4133_p5 = pneg %p4132_p4 }
 0x85f   : > { %p4138_p7 = scmp.lt.s32.totalorder %s4136_s23, %s4130_s16 }
 0x861   : > { %p4139_p9 = por %p4138_p7, %p4137_p6 }
 0x863   : > { %p4140_p10 = pnand %p4139_p9, %p4133_p5 }
 0x865   : > { %4143 = shalt.err (!%p4140_p10)
}
 0x866   : > { %s4144_s22 = scalar_lea.hbm %s5531_s30, 4096  ;;  %s4148_s18 = scalar_lea.hbm %s5775_s9, 16384 }
 0x867   : > { %p4145_p11 = scmp.ne.s32.totalorder %s5531_s30, %s4144_s22  ;;  %p4149_p0 = scmp.lt.u32.totalorder %s5531_s30, %s5775_s9 }
 0x868   : > { %p4150_p1 = scmp.lt.u32.totalorder %s4148_s18, %s4144_s22  ;;  %p4152_p4 = scmp.lt.u32.totalorder %s4144_s22, %s5531_s30 }
 0x869   : > { %p4146_p12 = pnand %p4145_p11, %p4334_p3 }
 0x86a   : > { %p4151_p2 = por %p4150_p1, %p4149_p0 }
 0x86b   : > { %p4147_p13 = pneg %p4146_p12 }
 0x86c   : > { %p4153_p5 = por %p4152_p4, %p4151_p2 }
 0x86e   : > { %p4154_p6 = pnand %p4153_p5, %p4147_p13 }
 0x870   : > { %4157 = shalt.err (!%p4154_p6)
}
 0x871   : > { %s4232_s25 = smov 128  }
 0x872   : > { %3805 = dma.vmem_to_hbm [thread:$0]  (%p4334_p3), %s5526_s20, 4096, %s5531_s30, %s5535_s15, %s4232_s25, %s4232_s25, %s4230_s21  }
 0x873 PF: > { %s5777_s19 = sld [smem:[#allocation11_spill]]  ;;  %s5778_s14 = sld [smem:[#allocation7_spill]] }
 0x879   : > { %p3811_p7 = scmp.ge.s32.totalorder %s5777_s19, 2  ;;  %s2773_s0 = sand.u32 1, %s5778_s14  }
 0x87a   : > { %s2774_s1 = scalar_lea.sflag [#allocation5], %s2773_s0 }
 0x87b   : > { %p3808_p9 = pnand %p3811_p7, %p4343_p8 }
 0x87d   : > { %4191 = dma.done.wait (!%p3808_p9), %s2774_s1, 4096  }
 0x87e   : > { %4193 = vsyncadd (!%p3808_p9), %s2774_s1, 4294963200  ;;  %s23_s16 = sadd.s32 1, %s5777_s19   ;;  %s5780_s24 = sld [smem:[#allocation8_spill]] }
 0x87f   : > { %p20_p10 = scmp.ge.s32.totalorder %s23_s16, 6   ;;  %s5781_s11 = sld [smem:[#allocation16_spill]] }
 0x880   : > { %s5782_s12 = sld [smem:[#allocation9_spill]]  ;;  %s5783_s13 = sld [smem:[#allocation10_spill]] }
 0x881   : > { %s5784_s14 = sld [smem:[#allocation12_spill]]  ;;  %s5785_s15 = sld [smem:[#allocation14_spill]] }
 0x882   : > { %s5786_s30 = smov %s4200_s10  ;;  %22 = sbr.rel (!%p20_p10) target bundleno = 9 (0x9), region = 132 }
 0x884   : > { %s5787_s10 = smov %s5780_s24 }
 0x889   :  { %2779 = vsyncpa [#allocation5], 1 }
 0x88a   :  { %2781 = vsyncpa [#allocation5 + $0x1], 1 }

</bundles_post_ra>
